<compile_context>
chip_gen: v6e
topology: v6e:2x2x1
jax: 0.10.0
libtpu: 0.0.40
codegen_flags: <defaults>
</compile_context>

<pallas_src>
import jax
import jax.numpy as jnp
from jax.experimental import pallas as pl
from jax.experimental.pallas import tpu as pltpu

MAX_OBS_POINTS = 1400
DIMS = [MAX_OBS_POINTS, 512, 256, 128, 28]          # logical (PyTorch) dims
N_PAD = 128                                         # 28 -> lane-dense output
PADDED_DIMS = [MAX_OBS_POINTS, 512, 256, 128, N_PAD]


def encoder_kernel(alpha_ref,               # (3,) f32 in SMEM: PReLU alphas
                   x_ref,                   # (TB, 1400) f32 (or bf16) batch tile
                   w1_ref, b1_ref,          # (1400, 512) bf16, (1, 512) f32
                   w2_ref, b2_ref,          # (512, 256)  bf16, (1, 256) f32
                   w3_ref, b3_ref,          # (256, 128)  bf16, (1, 128) f32
                   w4_ref, b4_ref,          # (128, N_PAD) bf16, (1, N_PAD) f32
                   o_ref):                  # (TB, N_PAD) f32
    a1 = alpha_ref[0]
    a2 = alpha_ref[1]
    a3 = alpha_ref[2]

    def prelu(h, a):
        # PReLU(x) = x if x > 0 else a * x  (matches PyTorch; x == 0 -> 0)
        return jnp.where(h > 0, h, a * h)

    # Cast the input tile to bf16 in-kernel (no extra wrapper HBM pass).
    x = x_ref[...].astype(jnp.bfloat16)

    # All matmuls: bf16 operands on the MXU, f32 accumulation.
    h = jnp.dot(x, w1_ref[...], preferred_element_type=jnp.float32)
    h = prelu(h + b1_ref[...], a1)

    h = jnp.dot(h.astype(jnp.bfloat16), w2_ref[...],
                preferred_element_type=jnp.float32)
    h = prelu(h + b2_ref[...], a2)

    h = jnp.dot(h.astype(jnp.bfloat16), w3_ref[...],
                preferred_element_type=jnp.float32)
    h = prelu(h + b3_ref[...], a3)

    h = jnp.dot(h.astype(jnp.bfloat16), w4_ref[...],
                preferred_element_type=jnp.float32)
    o_ref[...] = (h + b4_ref[...]).astype(o_ref.dtype)


def _round_up(n: int, m: int) -> int:
    return ((n + m - 1) // m) * m


def _batch_tile(batch: int) -> int:
    """Batch tile: multiple of 16 (bf16 packs 16 rows/vreg), floor 32, cap 512.

    For B >= ~80 the tile is chosen so the grid has >= 2 steps, letting the
    "parallel" batch axis shard across both TensorCores on v7x.
    """
    b = _round_up(max(int(batch), 1), 16)
    if b <= 64:
        return max(b, 32)
    return min(512, _round_up((b + 1) // 2, 16))


def prepare_kernel_params(params):
    """One-time prep (outside the hot path): bf16 weights, pad layer-4 to 128."""
    kp = {}
    kp["w1"] = params["w1"].astype(jnp.bfloat16)              # (1400, 512)
    kp["b1"] = params["b1"].astype(jnp.float32)
    kp["w2"] = params["w2"].astype(jnp.bfloat16)
    kp["b2"] = params["b2"].astype(jnp.float32)
    kp["w3"] = params["w3"].astype(jnp.bfloat16)
    kp["b3"] = params["b3"].astype(jnp.float32)
    w4 = params["w4"].astype(jnp.bfloat16)
    kp["w4"] = jnp.pad(w4, ((0, 0), (0, N_PAD - w4.shape[1])))
    kp["b4"] = jnp.pad(params["b4"].astype(jnp.float32),
                       ((0, 0), (0, N_PAD - params["b4"].shape[1])))
    kp["alphas"] = params["alphas"].astype(jnp.float32)
    return kp


@jax.jit
def encoder_forward(x, kparams):
    """x: (B, 1400) f32 (or bf16).  kparams: output of prepare_kernel_params."""
    B = x.shape[0]
    TB = _batch_tile(B)
    B_pad = _round_up(B, TB)

    # Only the batch axis is ever padded (and only if needed); K stays 1400.
    if B_pad != B:
        x = jnp.pad(x, ((0, B_pad - B), (0, 0)))

    grid = (B_pad // TB,)

    vmem = pl.BlockSpec(memory_space=pltpu.MemorySpace.VMEM)   # resident weights
    smem = pl.BlockSpec(memory_space=pltpu.MemorySpace.SMEM)
    in_specs = [
        smem,                                                   # alphas
        pl.BlockSpec((TB, MAX_OBS_POINTS), lambda i: (i, 0)),   # x batch tile
        vmem, vmem,                                             # w1, b1
        vmem, vmem,                                             # w2, b2
        vmem, vmem,                                             # w3, b3
        vmem, vmem,                                             # w4, b4
    ]
    out_specs = pl.BlockSpec((TB, N_PAD), lambda i: (i, 0))

    layer_dots = sum(din * dout
                     for din, dout in zip(PADDED_DIMS[:-1], PADDED_DIMS[1:]))
    x_bytes = jnp.dtype(x.dtype).itemsize
    flops = 2 * B_pad * layer_dots
    bytes_accessed = (B_pad * MAX_OBS_POINTS * x_bytes   # x stream
                      + layer_dots * 2                   # weights (bf16)
                      + sum(PADDED_DIMS[1:]) * 4         # biases (f32)
                      + B_pad * N_PAD * 4)               # output (f32)

    out = pl.pallas_call(
        encoder_kernel,
        out_shape=jax.ShapeDtypeStruct((B_pad, N_PAD), jnp.float32),
        grid=grid,
        in_specs=in_specs,
        out_specs=out_specs,
        compiler_params=pltpu.CompilerParams(
            dimension_semantics=("parallel",),
            vmem_limit_bytes=32 * 1024 * 1024,
        ),
        cost_estimate=pl.CostEstimate(
            flops=flops, transcendentals=0, bytes_accessed=bytes_accessed),
    )(kparams["alphas"], x,
      kparams["w1"], kparams["b1"],
      kparams["w2"], kparams["b2"],
      kparams["w3"], kparams["b3"],
      kparams["w4"], kparams["b4"])

    return out[:B, :DIMS[-1]]


def init_params(key):
    """Deterministic synthetic parameters (shapes match the PyTorch module)."""
    params = {}
    keys = jax.random.split(key, 8)
    for li, (din, dout) in enumerate(zip(DIMS[:-1], DIMS[1:]), start=1):
        scale = 1.0 / jnp.sqrt(jnp.float32(din))
        # Stored as (in, out) == transpose of PyTorch's (out, in) weight.
        w = jax.random.uniform(keys[2 * (li - 1)], (din, dout), jnp.float32,
                               minval=-scale, maxval=scale)
        b = jax.random.uniform(keys[2 * (li - 1) + 1], (1, dout), jnp.float32,
                               minval=-scale, maxval=scale)
        params[f"w{li}"] = w
        params[f"b{li}"] = b
    # PReLU default init: alpha = 0.25 (one scalar per PReLU layer).
    params["alphas"] = jnp.array([0.25, 0.25, 0.25], dtype=jnp.float32)
    return params


def encoder_reference(x, params):
    """Pure-JAX reference with the same bf16-matmul / f32-accumulate precision."""
    def prelu(h, a):
        return jnp.where(h > 0, h, a * h)

    def lin(h, w, b):
        return jnp.dot(h.astype(jnp.bfloat16), w.astype(jnp.bfloat16),
                       preferred_element_type=jnp.float32) + b

    h = prelu(lin(x, params["w1"], params["b1"]), params["alphas"][0])
    h = prelu(lin(h, params["w2"], params["b2"]), params["alphas"][1])
    h = prelu(lin(h, params["w3"], params["b3"]), params["alphas"][2])
    return lin(h, params["w4"], params["b4"])


if __name__ == "__main__":
    key = jax.random.PRNGKey(0)
    k_param, k_x = jax.random.split(key)
    params = init_params(k_param)
    kparams = prepare_kernel_params(params)

    batch = 8
    x = jax.random.normal(k_x, (batch, MAX_OBS_POINTS), dtype=jnp.float32)

    out = jax.block_until_ready(encoder_forward(x, kparams))
    ref = jax.block_until_ready(encoder_reference(x, params))

    assert out.shape == (batch, DIMS[-1]), out.shape
    assert jnp.allclose(out, ref, atol=1e-2, rtol=1e-2), \
        float(jnp.max(jnp.abs(out - ref)))

    print("KERNEL_OK")
</pallas_src>

<mosaic_0001>
module attributes {stable_mosaic.version = 11 : i64} {
  func.func @encoder_kernel(%arg0: i32, %arg1: memref<3xf32, #tpu.memory_space<smem>>, %arg2: memref<32x1400xf32, #tpu.memory_space<vmem>>, %arg3: memref<1400x512xbf16, #tpu.memory_space<vmem>>, %arg4: memref<1x512xf32, #tpu.memory_space<vmem>>, %arg5: memref<512x256xbf16, #tpu.memory_space<vmem>>, %arg6: memref<1x256xf32, #tpu.memory_space<vmem>>, %arg7: memref<256x128xbf16, #tpu.memory_space<vmem>>, %arg8: memref<1x128xf32, #tpu.memory_space<vmem>>, %arg9: memref<128x128xbf16, #tpu.memory_space<vmem>>, %arg10: memref<1x128xf32, #tpu.memory_space<vmem>>, %arg11: memref<32x128xf32, #tpu.memory_space<vmem>>) attributes {dimension_semantics = [#tpu.dimension_semantics<parallel>], iteration_bounds = array<i64: 1>, scalar_prefetch = 0 : i64, scratch_operands = 0 : i64, tpu.core_type = #tpu.core_type<tc>, window_params = [{transform_indices = @transform_0, window_bounds = array<i64: 3>}, {transform_indices = @transform_1, window_bounds = array<i64: 32, 1400>}, {pipeline_mode = #tpu.pipeline_mode<synchronous>, transform_indices = @transform_2, window_bounds = array<i64: 1400, 512>}, {pipeline_mode = #tpu.pipeline_mode<synchronous>, transform_indices = @transform_3, window_bounds = array<i64: 1, 512>}, {pipeline_mode = #tpu.pipeline_mode<synchronous>, transform_indices = @transform_4, window_bounds = array<i64: 512, 256>}, {pipeline_mode = #tpu.pipeline_mode<synchronous>, transform_indices = @transform_5, window_bounds = array<i64: 1, 256>}, {pipeline_mode = #tpu.pipeline_mode<synchronous>, transform_indices = @transform_6, window_bounds = array<i64: 256, 128>}, {pipeline_mode = #tpu.pipeline_mode<synchronous>, transform_indices = @transform_7, window_bounds = array<i64: 1, 128>}, {pipeline_mode = #tpu.pipeline_mode<synchronous>, transform_indices = @transform_8, window_bounds = array<i64: 128, 128>}, {pipeline_mode = #tpu.pipeline_mode<synchronous>, transform_indices = @transform_9, window_bounds = array<i64: 1, 128>}, {transform_indices = @transform_10, window_bounds = array<i64: 32, 128>}]} {
    %c0 = arith.constant 0 : index
    %0 = memref.load %arg1[%c0] : memref<3xf32, #tpu.memory_space<smem>>
    %c1 = arith.constant 1 : index
    %1 = memref.load %arg1[%c1] : memref<3xf32, #tpu.memory_space<smem>>
    %c2 = arith.constant 2 : index
    %2 = memref.load %arg1[%c2] : memref<3xf32, #tpu.memory_space<smem>>
    %c0_0 = arith.constant 0 : index
    %c0_1 = arith.constant 0 : index
    %3 = vector.load %arg2[%c0_0, %c0_1] : memref<32x1400xf32, #tpu.memory_space<vmem>>, vector<32x1400xf32>
    %4 = arith.truncf %3 : vector<32x1400xf32> to vector<32x1400xbf16>
    %c0_2 = arith.constant 0 : index
    %c0_3 = arith.constant 0 : index
    %5 = vector.load %arg3[%c0_2, %c0_3] : memref<1400x512xbf16, #tpu.memory_space<vmem>>, vector<1400x512xbf16>
    %cst = arith.constant dense<0.000000e+00> : vector<32x512xf32>
    %6 = tpu.matmul %4, %5, %cst {dimension_numbers = #tpu.dot_dimension_numbers<[1], [0], [0], [1], [0, 0, 1, 1], [], []>} : vector<32x1400xbf16>, vector<1400x512xbf16>, vector<32x512xf32> -> vector<32x512xf32>
    %c0_4 = arith.constant 0 : index
    %c0_5 = arith.constant 0 : index
    %7 = vector.load %arg4[%c0_4, %c0_5] : memref<1x512xf32, #tpu.memory_space<vmem>>, vector<1x512xf32>
    %8 = vector.broadcast %7 : vector<1x512xf32> to vector<32x512xf32>
    %9 = arith.addf %6, %8 : vector<32x512xf32>
    %cst_6 = arith.constant 0.000000e+00 : f32
    %10 = vector.broadcast %cst_6 : f32 to vector<32x512xf32>
    %11 = arith.cmpf ogt, %9, %10 : vector<32x512xf32>
    %12 = vector.broadcast %0 : f32 to vector<32x512xf32>
    %13 = arith.mulf %12, %9 : vector<32x512xf32>
    %14 = arith.select %11, %9, %13 : vector<32x512xi1>, vector<32x512xf32>
    %15 = arith.truncf %14 : vector<32x512xf32> to vector<32x512xbf16>
    %c0_7 = arith.constant 0 : index
    %c0_8 = arith.constant 0 : index
    %16 = vector.load %arg5[%c0_7, %c0_8] : memref<512x256xbf16, #tpu.memory_space<vmem>>, vector<512x256xbf16>
    %cst_9 = arith.constant dense<0.000000e+00> : vector<32x256xf32>
    %17 = tpu.matmul %15, %16, %cst_9 {dimension_numbers = #tpu.dot_dimension_numbers<[1], [0], [0], [1], [0, 0, 1, 1], [], []>} : vector<32x512xbf16>, vector<512x256xbf16>, vector<32x256xf32> -> vector<32x256xf32>
    %c0_10 = arith.constant 0 : index
    %c0_11 = arith.constant 0 : index
    %18 = vector.load %arg6[%c0_10, %c0_11] : memref<1x256xf32, #tpu.memory_space<vmem>>, vector<1x256xf32>
    %19 = vector.broadcast %18 : vector<1x256xf32> to vector<32x256xf32>
    %20 = arith.addf %17, %19 : vector<32x256xf32>
    %cst_12 = arith.constant 0.000000e+00 : f32
    %21 = vector.broadcast %cst_12 : f32 to vector<32x256xf32>
    %22 = arith.cmpf ogt, %20, %21 : vector<32x256xf32>
    %23 = vector.broadcast %1 : f32 to vector<32x256xf32>
    %24 = arith.mulf %23, %20 : vector<32x256xf32>
    %25 = arith.select %22, %20, %24 : vector<32x256xi1>, vector<32x256xf32>
    %26 = arith.truncf %25 : vector<32x256xf32> to vector<32x256xbf16>
    %c0_13 = arith.constant 0 : index
    %c0_14 = arith.constant 0 : index
    %27 = vector.load %arg7[%c0_13, %c0_14] : memref<256x128xbf16, #tpu.memory_space<vmem>>, vector<256x128xbf16>
    %cst_15 = arith.constant dense<0.000000e+00> : vector<32x128xf32>
    %28 = tpu.matmul %26, %27, %cst_15 {dimension_numbers = #tpu.dot_dimension_numbers<[1], [0], [0], [1], [0, 0, 1, 1], [], []>} : vector<32x256xbf16>, vector<256x128xbf16>, vector<32x128xf32> -> vector<32x128xf32>
    %c0_16 = arith.constant 0 : index
    %c0_17 = arith.constant 0 : index
    %29 = vector.load %arg8[%c0_16, %c0_17] : memref<1x128xf32, #tpu.memory_space<vmem>>, vector<1x128xf32>
    %30 = vector.broadcast %29 : vector<1x128xf32> to vector<32x128xf32>
    %31 = arith.addf %28, %30 : vector<32x128xf32>
    %cst_18 = arith.constant 0.000000e+00 : f32
    %32 = vector.broadcast %cst_18 : f32 to vector<32x128xf32>
    %33 = arith.cmpf ogt, %31, %32 : vector<32x128xf32>
    %34 = vector.broadcast %2 : f32 to vector<32x128xf32>
    %35 = arith.mulf %34, %31 : vector<32x128xf32>
    %36 = arith.select %33, %31, %35 : vector<32x128xi1>, vector<32x128xf32>
    %37 = arith.truncf %36 : vector<32x128xf32> to vector<32x128xbf16>
    %c0_19 = arith.constant 0 : index
    %c0_20 = arith.constant 0 : index
    %38 = vector.load %arg9[%c0_19, %c0_20] : memref<128x128xbf16, #tpu.memory_space<vmem>>, vector<128x128xbf16>
    %cst_21 = arith.constant dense<0.000000e+00> : vector<32x128xf32>
    %39 = tpu.matmul %37, %38, %cst_21 {dimension_numbers = #tpu.dot_dimension_numbers<[1], [0], [0], [1], [0, 0, 1, 1], [], []>} : vector<32x128xbf16>, vector<128x128xbf16>, vector<32x128xf32> -> vector<32x128xf32>
    %c0_22 = arith.constant 0 : index
    %c0_23 = arith.constant 0 : index
    %40 = vector.load %arg10[%c0_22, %c0_23] : memref<1x128xf32, #tpu.memory_space<vmem>>, vector<1x128xf32>
    %41 = vector.broadcast %40 : vector<1x128xf32> to vector<32x128xf32>
    %42 = arith.addf %39, %41 : vector<32x128xf32>
    %c0_24 = arith.constant 0 : index
    %c0_25 = arith.constant 0 : index
    %43 = vector.load %arg11[%c0_24, %c0_25] : memref<32x128xf32, #tpu.memory_space<vmem>>, vector<32x128xf32>
    tpu.vector_store %arg11[%c0_24, %c0_25], %42 {strides = array<i32>} : memref<32x128xf32, #tpu.memory_space<vmem>>, vector<32x128xf32>,
    return
  }
  func.func @transform_0(%arg0: i32) -> i32 {
    %c0_i32 = arith.constant 0 : i32
    %c0_i32_0 = arith.constant 0 : i32
    return %c0_i32 : i32
  }
  func.func @transform_1(%arg0: i32) -> (i32, i32) {
    %c0_i32 = arith.constant 0 : i32
    %c0_i32_0 = arith.constant 0 : i32
    return %arg0, %c0_i32 : i32, i32
  }
  func.func @transform_2(%arg0: i32) -> (i32, i32) {
    %c0_i32 = arith.constant 0 : i32
    %c0_i32_0 = arith.constant 0 : i32
    %c0_i32_1 = arith.constant 0 : i32
    return %c0_i32, %c0_i32_0 : i32, i32
  }
  func.func @transform_3(%arg0: i32) -> (i32, i32) {
    %c0_i32 = arith.constant 0 : i32
    %c0_i32_0 = arith.constant 0 : i32
    %c0_i32_1 = arith.constant 0 : i32
    return %c0_i32, %c0_i32_0 : i32, i32
  }
  func.func @transform_4(%arg0: i32) -> (i32, i32) {
    %c0_i32 = arith.constant 0 : i32
    %c0_i32_0 = arith.constant 0 : i32
    %c0_i32_1 = arith.constant 0 : i32
    return %c0_i32, %c0_i32_0 : i32, i32
  }
  func.func @transform_5(%arg0: i32) -> (i32, i32) {
    %c0_i32 = arith.constant 0 : i32
    %c0_i32_0 = arith.constant 0 : i32
    %c0_i32_1 = arith.constant 0 : i32
    return %c0_i32, %c0_i32_0 : i32, i32
  }
  func.func @transform_6(%arg0: i32) -> (i32, i32) {
    %c0_i32 = arith.constant 0 : i32
    %c0_i32_0 = arith.constant 0 : i32
    %c0_i32_1 = arith.constant 0 : i32
    return %c0_i32, %c0_i32_0 : i32, i32
  }
  func.func @transform_7(%arg0: i32) -> (i32, i32) {
    %c0_i32 = arith.constant 0 : i32
    %c0_i32_0 = arith.constant 0 : i32
    %c0_i32_1 = arith.constant 0 : i32
    return %c0_i32, %c0_i32_0 : i32, i32
  }
  func.func @transform_8(%arg0: i32) -> (i32, i32) {
    %c0_i32 = arith.constant 0 : i32
    %c0_i32_0 = arith.constant 0 : i32
    %c0_i32_1 = arith.constant 0 : i32
    return %c0_i32, %c0_i32_0 : i32, i32
  }
  func.func @transform_9(%arg0: i32) -> (i32, i32) {
    %c0_i32 = arith.constant 0 : i32
    %c0_i32_0 = arith.constant 0 : i32
    %c0_i32_1 = arith.constant 0 : i32
    return %c0_i32, %c0_i32_0 : i32, i32
  }
  func.func @transform_10(%arg0: i32) -> (i32, i32) {
    %c0_i32 = arith.constant 0 : i32
    %c0_i32_0 = arith.constant 0 : i32
    return %arg0, %c0_i32 : i32, i32
  }
}

</mosaic_0001>

<bundles_post_ra>
// kernel: encoder_forward.1
= control target key start
LH: loop header
LB: loop body
LE: loop exit
PB: predicated region body
PF: predicated region fallthrough
CT: control target
= control target key end

     0   :  { %15 = vsyncpa [#allocation4], 0  ;;  %s5761_s0 = inlined_call_operand.hbm [shape: f32[3], index: 0, kind: input, shape index: {}]   ;;  %s5762_s1 = inlined_call_operand.vmem [shape: f32[32,1400], index: 1, kind: input, shape index: {}]   ;;  %s5763_s2 = inlined_call_operand.hbm [shape: bf16[1400,512], index: 2, kind: input, shape index: {}]   ;;  %s5764_s3 = inlined_call_operand.hbm [shape: f32[1,512], index: 3, kind: input, shape index: {}]   ;;  %s5765_s4 = inlined_call_operand.hbm [shape: bf16[512,256], index: 4, kind: input, shape index: {}]   ;;  %s5766_s5 = inlined_call_operand.hbm [shape: f32[1,256], index: 5, kind: input, shape index: {}]   ;;  %s5767_s6 = inlined_call_operand.hbm [shape: bf16[256,128], index: 6, kind: input, shape index: {}]   ;;  %s5768_s7 = inlined_call_operand.hbm [shape: f32[1,128], index: 7, kind: input, shape index: {}]   ;;  %s5769_s8 = inlined_call_operand.hbm [shape: bf16[128,128], index: 8, kind: input, shape index: {}]   ;;  %s5770_s9 = inlined_call_operand.hbm [shape: f32[1,128], index: 9, kind: input, shape index: {}]   ;;  %s5771_s10 = inlined_call_operand.vmem [shape: f32[32,128], index: 10, kind: output, shape index: {}]  }
   0x1   :  { %16 = vsyncpa [#allocation3], 0 }
   0x2   :  { %17 = vsyncpa [#allocation7], 0 }
   0x3   :  { %18 = vsyncpa [#allocation10], 0 }
   0x4   :  { %19 = vsyncpa [#allocation13], 0 }
   0x5   :  { %20 = vsyncpa [#allocation16], 0  ;;  %s5266_s13 = smov [#allocation6]   ;;  %s5267_s15 = smov [#allocation9]  }
   0x6   :  { %s49_s14 = sshll.u32 %s5266_s13, 4  ;;  %s71_s16 = sshll.u32 %s5267_s15, 4  ;;  %s50_s14 = int_to_ptr.vmem [resolvable:$true] %s49_s14  ;;  %s72_s16 = int_to_ptr.vmem [resolvable:$true] %s71_s16 }
   0x7   :  { %s5094_s17 = scalar_lea.vmem %s50_s14, 64  ;;  %p5099_p1 = scmp.lt.s32.totalorder %s50_s14, %s50_s14 }
   0x8   :  { %p5095_p0 = scmp.ne.s32.totalorder %s50_s14, %s5094_s17  ;;  %p5100_p2 = scmp.lt.s32.totalorder %s5094_s17, %s5094_s17 }
   0xa   :  { %p5101_p3 = por %p5100_p2, %p5099_p1 }
   0xc   :  { %p5102_p4 = pnand %p5101_p3, %p5095_p0 }
   0xe   :  { %5105 = shalt.err (!%p5102_p4)
}
   0xf   :  { %52 = dma.hbm_to_vmem [thread:$0]  %s5764_s3, 64, %s50_s14, [#allocation7]  }
  0x10   :  { %s5114_s20 = scalar_lea.vmem %s72_s16, 32  ;;  %p5119_p6 = scmp.lt.s32.totalorder %s72_s16, %s72_s16 }
  0x11   :  { %p5115_p5 = scmp.ne.s32.totalorder %s72_s16, %s5114_s20  ;;  %p5120_p7 = scmp.lt.s32.totalorder %s5114_s20, %s5114_s20 }
  0x13   :  { %p5121_p8 = por %p5120_p7, %p5119_p6 }
  0x15   :  { %p5122_p9 = pnand %p5121_p8, %p5115_p5 }
  0x17   :  { %5125 = shalt.err (!%p5122_p9)
}
  0x18   :  { %74 = dma.hbm_to_vmem [thread:$0]  %s5766_s5, 32, %s72_s16, [#allocation10]  }
  0x19   :  { %s5268_s23 = smov [#allocation12]   ;;  %s5269_s25 = smov [#allocation5]  }
  0x1a   :  { %s93_s24 = sshll.u32 %s5268_s23, 4  ;;  %s36_s26 = sshll.u32 %s5269_s25, 4  ;;  %s94_s24 = int_to_ptr.vmem [resolvable:$true] %s93_s24  ;;  %s37_s26 = int_to_ptr.vmem [resolvable:$true] %s36_s26 }
  0x1b   :  { %s5134_s27 = scalar_lea.vmem %s94_s24, 16  ;;  %s5138_s28 = scalar_lea.vmem %s94_s24, 32 }
  0x1c   :  { %p5135_p10 = scmp.ne.s32.totalorder %s94_s24, %s5134_s27  ;;  %p5139_p11 = scmp.lt.s32.totalorder %s94_s24, %s94_s24 }
  0x1d   :  { %p5140_p12 = scmp.lt.s32.totalorder %s5138_s28, %s5134_s27 }
  0x1f   :  { %p5141_p13 = por %p5140_p12, %p5139_p11 }
  0x21   :  { %p5142_p0 = pnand %p5141_p13, %p5135_p10 }
  0x23   :  { %5145 = shalt.err (!%p5142_p0)
}
  0x24   :  { %96 = dma.hbm_to_vmem [thread:$0]  %s5768_s7, 16, %s94_s24, [#allocation13]  }
  0x25   :  { %s5270_s30 = smov [#allocation2]   ;;  %s5162_s12 = scalar_lea.vmem %s37_s26, 44800 }
  0x26   :  { %28 = dma.hbm_to_smem %s5761_s0, 16, %s5270_s30, [#allocation4]  }
  0x27   :  { %p5163_p1 = scmp.ne.s32.totalorder %s37_s26, %s5162_s12  ;;  %p5167_p2 = scmp.lt.s32.totalorder %s37_s26, %s37_s26 }
  0x28   :  { %p5168_p3 = scmp.lt.s32.totalorder %s5162_s12, %s5162_s12 }
  0x2a   :  { %p5169_p4 = por %p5168_p3, %p5167_p2 }
  0x2c   :  { %p5170_p5 = pnand %p5169_p4, %p5163_p1 }
  0x2e   :  { %5173 = shalt.err (!%p5170_p5)
}
  0x2f   :  { %s5271_s13 = smov 256   ;;  %s5272_s14 = smov 16  }
  0x30   :  { %42 = dma.hbm_to_vmem [thread:$0]  %s5763_s2, 44800, %s37_s26, [#allocation3], %s5271_s13, %s5271_s13, %s5272_s14  }
  0x31   :  { %s5273_s7 = smov [#allocation8]  }
  0x32   :  { %s58_s17 = sshll.u32 %s5273_s7, 4  ;;  %s59_s17 = int_to_ptr.vmem [resolvable:$true] %s58_s17 }
  0x33   :  { %s5182_s18 = scalar_lea.vmem %s59_s17, 8192  ;;  %p5187_p7 = scmp.lt.s32.totalorder %s59_s17, %s59_s17 }
  0x34   :  { %p5183_p6 = scmp.ne.s32.totalorder %s59_s17, %s5182_s18  ;;  %p5188_p8 = scmp.lt.s32.totalorder %s5182_s18, %s5182_s18 }
  0x36   :  { %p5189_p9 = por %p5188_p8, %p5187_p7 }
  0x38   :  { %p5190_p10 = pnand %p5189_p9, %p5183_p6 }
  0x3a   :  { %5193 = shalt.err (!%p5190_p10)
}
  0x3b   :  { %s5274_s0 = smov 128   ;;  %s5275_s19 = smov 8  }
  0x3c   :  { %64 = dma.hbm_to_vmem [thread:$0]  %s5765_s4, 8192, %s59_s17, [#allocation7], %s5274_s0, %s5274_s0, %s5275_s19  }
  0x3d   :  { %s5276_s22 = smov [#allocation11]  }
  0x3e   :  { %s80_s23 = sshll.u32 %s5276_s22, 4  ;;  %s81_s23 = int_to_ptr.vmem [resolvable:$true] %s80_s23 }
  0x3f   :  { %s5202_s2 = scalar_lea.vmem %s81_s23, 2048  ;;  %p5207_p12 = scmp.lt.s32.totalorder %s81_s23, %s81_s23 }
  0x40   :  { %p5203_p11 = scmp.ne.s32.totalorder %s81_s23, %s5202_s2  ;;  %p5208_p13 = scmp.lt.s32.totalorder %s5202_s2, %s5202_s2 }
  0x42   :  { %p5209_p0 = por %p5208_p13, %p5207_p12 }
  0x44   :  { %p5210_p1 = pnand %p5209_p0, %p5203_p11 }
  0x46   :  { %5213 = shalt.err (!%p5210_p1)
}
  0x47   :  { %s5277_s24 = smov 64   ;;  %s5278_s25 = smov 4  }
  0x48   :  { %86 = dma.hbm_to_vmem [thread:$0]  %s5767_s6, 2048, %s81_s23, [#allocation10], %s5277_s24, %s5277_s24, %s5278_s25  }
  0x49   :  { %s5279_s28 = smov [#allocation14]   ;;  %s5280_s4 = smov [#allocation15]  }
  0x4a   :  { %s102_s3 = sshll.u32 %s5279_s28, 4  ;;  %s115_s29 = sshll.u32 %s5280_s4, 4  ;;  %s103_s3 = int_to_ptr.vmem [resolvable:$true] %s102_s3  ;;  %s116_s29 = int_to_ptr.vmem [resolvable:$true] %s115_s29 }
  0x4b   :  { %s5222_s30 = scalar_lea.vmem %s103_s3, 1024  ;;  %p5227_p3 = scmp.lt.s32.totalorder %s103_s3, %s103_s3 }
  0x4c   :  { %p5223_p2 = scmp.ne.s32.totalorder %s103_s3, %s5222_s30  ;;  %p5228_p4 = scmp.lt.s32.totalorder %s5222_s30, %s5222_s30 }
  0x4e   :  { %p5229_p5 = por %p5228_p4, %p5227_p3 }
  0x50   :  { %p5230_p6 = pnand %p5229_p5, %p5223_p2 }
  0x52   :  { %5233 = shalt.err (!%p5230_p6)
}
  0x53   :  { %108 = dma.hbm_to_vmem [thread:$0]  %s5769_s8, 1024, %s103_s3, [#allocation13], %s5277_s24, %s5277_s24, %s5278_s25  }
  0x54   :  { %s5242_s12 = scalar_lea.vmem %s116_s29, 16  ;;  %s5246_s6 = scalar_lea.vmem %s116_s29, 32 }
  0x55   :  { %p5243_p7 = scmp.ne.s32.totalorder %s116_s29, %s5242_s12  ;;  %p5247_p8 = scmp.lt.s32.totalorder %s116_s29, %s116_s29 }
  0x56   :  { %p5248_p9 = scmp.lt.s32.totalorder %s5246_s6, %s5242_s12 }
  0x58   :  { %p5249_p10 = por %p5248_p9, %p5247_p8 }
  0x5a   :  { %p5250_p11 = pnand %p5249_p10, %p5243_p7 }
  0x5c   :  { %5253 = shalt.err (!%p5250_p11)
}
  0x5d   :  { %118 = dma.hbm_to_vmem [thread:$0]  %s5770_s9, 16, %s116_s29, [#allocation16]  }
  0x5e   :  { %5254 = dma.done.wait [#allocation4], 16  }
  0x5f   :  { %5255 = vsyncadd [#allocation4], 4294967280 }
  0x60   :  { %5256 = dma.done.wait [#allocation3], 44800  }
  0x61   :  { %5257 = vsyncadd [#allocation3], 4294922496 }
  0x62   :  { %5258 = dma.done.wait [#allocation7], 8256  }
  0x63   :  { %5259 = vsyncadd [#allocation7], 4294959040 }
  0x64   :  { %5260 = dma.done.wait [#allocation10], 2080  }
  0x65   :  { %5261 = vsyncadd [#allocation10], 4294965216 }
  0x66   :  { %5262 = dma.done.wait [#allocation13], 1040  }
  0x67   :  { %5263 = vsyncadd [#allocation13], 4294966256 }
  0x68   :  { %5264 = dma.done.wait [#allocation16], 16  }
  0x69   :  { %5265 = vsyncadd [#allocation16], 4294967280 }
  0x6a   :  { %146 = sfence }
  0x6b   :  { %v4440_v0 = vld [vmem:[#allocation5 + $0xe4] ss:$16 sps:$4 sm:$0xff]   ;;  %v4444_v2 = vld [vmem:[#allocation5 + $0xe0] ss:$16 sps:$4 sm:$0xff]   ;;  %v152_v46 = vld [vmem:[%s5762_s1 + $0x8] sm:$0xff]  ;;  %vm2346_vm0 = vcmask 1043456  }
  0x6c   :  { %v4442_v1 = vld [vmem:[#allocation5 + $0x2e4] ss:$16 sps:$4 sm:$0xff]   ;;  %2359 = vmatprep.subr.bf16.mxu0 %v4440_v0  ;;  %v4445_v3 = vld [vmem:[#allocation5 + $0x2e0] ss:$16 sps:$4 sm:$0xff]   ;;  %v154_v48 = vld [vmem:[%s5762_s1 + $0x18] sm:$0xff]  ;;  %vm2339_vm1 = vcmask 982016  }
  0x6d   :  { %2412 = vmatprep.subr.bf16.mxu1 %v4442_v1  ;;  %v4446_v4 = vld [vmem:[#allocation5 + $0xc4] ss:$16 sps:$4 sm:$0xff]   ;;  %2360 = vmatpush1.bf16.msra.mxu0 %v4444_v2  ;;  %v4450_v6 = vld [vmem:[#allocation5 + $0xc0] ss:$16 sps:$4 sm:$0xff]   ;;  %s3916_s9 = sld [smem:[#allocation2 + $0x1]] }
  0x6e   :  { %2413 = vmatpush1.bf16.msra.mxu1 %v4445_v3  ;;  %v4448_v5 = vld [vmem:[#allocation5 + $0x2c4] ss:$16 sps:$4 sm:$0xff]   ;;  %2361 = vmatprep.subr.bf16.mxu0 %v4446_v4  ;;  %v4451_v7 = vld [vmem:[#allocation5 + $0x2c0] ss:$16 sps:$4 sm:$0xff]   ;;  %s3917_s15 = sld [smem:[#allocation2 + $0x2]] }
  0x6f   :  { %2414 = vmatprep.subr.bf16.mxu1 %v4448_v5  ;;  %v4452_v8 = vld [vmem:[#allocation5 + $0xa4] ss:$16 sps:$4 sm:$0xff]   ;;  %v4456_v10 = vld [vmem:[#allocation5 + $0xa0] ss:$16 sps:$4 sm:$0xff]  }
  0x70   :  { %v4454_v9 = vld [vmem:[#allocation5 + $0x2a4] ss:$16 sps:$4 sm:$0xff]   ;;  %v4457_v11 = vld [vmem:[#allocation5 + $0x2a0] ss:$16 sps:$4 sm:$0xff]  }
  0x71   :  { %2362 = vmatpush1.bf16.msra.mxu0 %v4450_v6  ;;  %v4458_v12 = vld [vmem:[#allocation5 + $0x84] ss:$16 sps:$4 sm:$0xff]   ;;  %v4462_v14 = vld [vmem:[#allocation5 + $0x80] ss:$16 sps:$4 sm:$0xff]  }
  0x72   :  { %2415 = vmatpush1.bf16.msra.mxu1 %v4451_v7  ;;  %2363 = vmatprep.subr.bf16.mxu0 %v4452_v8  ;;  %v4460_v13 = vld [vmem:[#allocation5 + $0x284] ss:$16 sps:$4 sm:$0xff]   ;;  %v4463_v15 = vld [vmem:[#allocation5 + $0x280] ss:$16 sps:$4 sm:$0xff]   ;;  %v162_v7 = vld [vmem:[%s5762_s1 + $0x58] sm:$0xff] }
  0x73   :  { %2416 = vmatprep.subr.bf16.mxu1 %v4454_v9  ;;  %v4464_v16 = vld [vmem:[#allocation5 + $0x64] ss:$16 sps:$4 sm:$0xff]   ;;  %v4468_v18 = vld [vmem:[#allocation5 + $0x60] ss:$16 sps:$4 sm:$0xff]   ;;  %v164_v9 = vld [vmem:[%s5762_s1 + $0x68] sm:$0xff] }
  0x74   :  { %v4466_v17 = vld [vmem:[#allocation5 + $0x264] ss:$16 sps:$4 sm:$0xff]   ;;  %v4469_v19 = vld [vmem:[#allocation5 + $0x260] ss:$16 sps:$4 sm:$0xff]  }
  0x75   :  { %2364 = vmatpush1.bf16.msra.mxu0 %v4456_v10  ;;  %v4470_v20 = vld [vmem:[#allocation5 + $0x44] ss:$16 sps:$4 sm:$0xff]   ;;  %v4474_v22 = vld [vmem:[#allocation5 + $0x40] ss:$16 sps:$4 sm:$0xff]  }
  0x76   :  { %2417 = vmatpush1.bf16.msra.mxu1 %v4457_v11  ;;  %2365 = vmatprep.subr.bf16.mxu0 %v4458_v12  ;;  %v4472_v21 = vld [vmem:[#allocation5 + $0x244] ss:$16 sps:$4 sm:$0xff]   ;;  %v4475_v23 = vld [vmem:[#allocation5 + $0x240] ss:$16 sps:$4 sm:$0xff]  }
  0x77   :  { %2418 = vmatprep.subr.bf16.mxu1 %v4460_v13  ;;  %v4476_v24 = vld [vmem:[#allocation5 + $0x24] ss:$16 sps:$4 sm:$0xff]   ;;  %v4480_v26 = vld [vmem:[#allocation5 + $0x20] ss:$16 sps:$4 sm:$0xff]  }
  0x78   :  { %v4478_v25 = vld [vmem:[#allocation5 + $0x224] ss:$16 sps:$4 sm:$0xff]   ;;  %v4481_v27 = vld [vmem:[#allocation5 + $0x220] ss:$16 sps:$4 sm:$0xff]  }
  0x79   :  { %2366 = vmatpush1.bf16.msra.mxu0 %v4462_v14  ;;  %v4482_v28 = vld [vmem:[#allocation5 + $0x4] ss:$16 sps:$4 sm:$0xff]   ;;  %v4486_v30 = vld [vmem:[#allocation5] ss:$16 sps:$4 sm:$0xff]  }
  0x7a   :  { %2419 = vmatpush1.bf16.msra.mxu1 %v4463_v15  ;;  %2367 = vmatprep.subr.bf16.mxu0 %v4464_v16  ;;  %v4484_v29 = vld [vmem:[#allocation5 + $0x204] ss:$16 sps:$4 sm:$0xff]   ;;  %v4487_v31 = vld [vmem:[#allocation5 + $0x200] ss:$16 sps:$4 sm:$0xff]  }
  0x7b   :  { %2420 = vmatprep.subr.bf16.mxu1 %v4466_v17  ;;  %v4488_v32 = vld [vmem:[#allocation5 + $0x1e4] ss:$16 sps:$4 sm:$0xff]   ;;  %v4492_v34 = vld [vmem:[#allocation5 + $0x1e0] ss:$16 sps:$4 sm:$0xff]  }
  0x7c   :  { %v4490_v33 = vld [vmem:[#allocation5 + $0x3e4] ss:$16 sps:$4 sm:$0xff]   ;;  %v4493_v35 = vld [vmem:[#allocation5 + $0x3e0] ss:$16 sps:$4 sm:$0xff]  }
  0x7d   :  { %2368 = vmatpush1.bf16.msra.mxu0 %v4468_v18  ;;  %v4494_v36 = vld [vmem:[#allocation5 + $0x1c4] ss:$16 sps:$4 sm:$0xff]   ;;  %v4498_v38 = vld [vmem:[#allocation5 + $0x1c0] ss:$16 sps:$4 sm:$0xff]  }
  0x7e   :  { %2421 = vmatpush1.bf16.msra.mxu1 %v4469_v19  ;;  %2369 = vmatprep.subr.bf16.mxu0 %v4470_v20  ;;  %v4496_v37 = vld [vmem:[#allocation5 + $0x3c4] ss:$16 sps:$4 sm:$0xff]   ;;  %v4499_v39 = vld [vmem:[#allocation5 + $0x3c0] ss:$16 sps:$4 sm:$0xff]  }
  0x7f   :  { %2422 = vmatprep.subr.bf16.mxu1 %v4472_v21  ;;  %v4500_v40 = vld [vmem:[#allocation5 + $0x1a4] ss:$16 sps:$4 sm:$0xff]   ;;  %v4504_v42 = vld [vmem:[#allocation5 + $0x1a0] ss:$16 sps:$4 sm:$0xff]  }
  0x80   :  { %v4502_v41 = vld [vmem:[#allocation5 + $0x3a4] ss:$16 sps:$4 sm:$0xff]   ;;  %v4505_v43 = vld [vmem:[#allocation5 + $0x3a0] ss:$16 sps:$4 sm:$0xff]  }
  0x81   :  { %2370 = vmatpush1.bf16.msra.mxu0 %v4474_v22  ;;  %v4506_v44 = vld [vmem:[#allocation5 + $0x184] ss:$16 sps:$4 sm:$0xff]   ;;  %v4510_v50 = vld [vmem:[#allocation5 + $0x180] ss:$16 sps:$4 sm:$0xff]  }
  0x82   :  { %2423 = vmatpush1.bf16.msra.mxu1 %v4475_v23  ;;  %2371 = vmatprep.subr.bf16.mxu0 %v4476_v24  ;;  %v4508_v45 = vld [vmem:[#allocation5 + $0x384] ss:$16 sps:$4 sm:$0xff]   ;;  %v4511_v51 = vld [vmem:[#allocation5 + $0x380] ss:$16 sps:$4 sm:$0xff]  }
  0x83   :  { %2424 = vmatprep.subr.bf16.mxu1 %v4478_v25  ;;  %v163_v47 = vld [vmem:[%s5762_s1 + $0x60] sm:$0xff]  ;;  %v165_v49 = vld [vmem:[%s5762_s1 + $0x70] sm:$0xff] }
  0x84   :  { %v4512_v52 = vld [vmem:[#allocation5 + $0x164] ss:$16 sps:$4 sm:$0xff]   ;;  %v5376_v53 = vpack.c.bf16 %v163_v47, %v152_v46  ;;  %v5378_v54 = vpack.c.bf16 %v165_v49, %v154_v48  ;;  %v4516_v56 = vld [vmem:[#allocation5 + $0x160] ss:$16 sps:$4 sm:$0xff]  }
  0x85   :  { %2372 = vmatpush1.bf16.msra.mxu0 %v4480_v26  ;;  %v4514_v55 = vld [vmem:[#allocation5 + $0x364] ss:$16 sps:$4 sm:$0xff]   ;;  %v4517_v57 = vld [vmem:[#allocation5 + $0x360] ss:$16 sps:$4 sm:$0xff]  }
  0x86   :  { %2425 = vmatpush1.bf16.msra.mxu1 %v4481_v27  ;;  %2373 = vmatprep.subr.bf16.mxu0 %v4482_v28  ;;  %v4518_v58 = vld [vmem:[#allocation5 + $0x144] ss:$16 sps:$4 sm:$0xff]   ;;  %v4522_v60 = vld [vmem:[#allocation5 + $0x140] ss:$16 sps:$4 sm:$0xff]  }
  0x87   :  { %2426 = vmatprep.subr.bf16.mxu1 %v4484_v29  ;;  %2391 = vmatprep.mubr.bf16.mxu0 %v5376_v53  ;;  %v4520_v59 = vld [vmem:[#allocation5 + $0x344] ss:$16 sps:$4 sm:$0xff]   ;;  %v4523_v61 = vld [vmem:[#allocation5 + $0x340] ss:$16 sps:$4 sm:$0xff]  }
  0x88   :  { %2444 = vmatprep.mubr.bf16.mxu1 %v5378_v54  ;;  %v4524_v62 = vld [vmem:[#allocation5 + $0x124] ss:$16 sps:$4 sm:$0xff]   ;;  %v4528_v0 = vld [vmem:[#allocation5 + $0x120] ss:$16 sps:$4 sm:$0xff]  }
  0x89   :  { %2374 = vmatpush1.bf16.msra.mxu0 %v4486_v30  ;;  %v4526_v63 = vld [vmem:[#allocation5 + $0x324] ss:$16 sps:$4 sm:$0xff]   ;;  %v4529_v1 = vld [vmem:[#allocation5 + $0x320] ss:$16 sps:$4 sm:$0xff]   ;;  %v174_v30 = vld [vmem:[%s5762_s1 + $0xb8] sm:$0xff] }
  0x8a   :  { %2427 = vmatpush1.bf16.msra.mxu1 %v4487_v31  ;;  %2375 = vmatprep.subr.bf16.mxu0 %v4488_v32  ;;  %v4530_v2 = vld [vmem:[#allocation5 + $0x104] ss:$16 sps:$4 sm:$0xff]   ;;  %v4534_v4 = vld [vmem:[#allocation5 + $0x100] ss:$16 sps:$4 sm:$0xff]  }
  0x8b   :  { %2428 = vmatprep.subr.bf16.mxu1 %v4490_v33  ;;  %v4532_v3 = vld [vmem:[#allocation5 + $0x304] ss:$16 sps:$4 sm:$0xff]   ;;  %v4535_v5 = vld [vmem:[#allocation5 + $0x300] ss:$16 sps:$4 sm:$0xff]  }
  0x8c   :  { %v151_v6 = vld [vmem:[%s5762_s1] sm:$0xff]  ;;  %v153_v8 = vld [vmem:[%s5762_s1 + $0x10] sm:$0xff] }
  0x8d   :  { %2376 = vmatpush2.bf16.msra.mxu0 %v4492_v34  ;;  %v4538_v10 = vld [vmem:[#allocation5 + $0x4e4] ss:$16 sps:$4 sm:$0xff]   ;;  %v5394_v12 = vpack.c.bf16 %v162_v7, %v151_v6  ;;  %v5396_v13 = vpack.c.bf16 %v164_v9, %v153_v8  ;;  %v4536_v14 = vld [vmem:[#allocation5 + $0x4e0] ss:$16 sps:$4 sm:$0xff]  }
  0x8e   :  { %2429 = vmatpush2.bf16.msra.mxu1 %v4493_v35  ;;  %2377 = vmatprep.subr.bf16.mxu0 %v4494_v36  ;;  %v4541_v11 = vld [vmem:[#allocation5 + $0x6e4] ss:$16 sps:$4 sm:$0xff]   ;;  %v4539_v15 = vld [vmem:[#allocation5 + $0x6e0] ss:$16 sps:$4 sm:$0xff]  }
  0x8f   :  { %2430 = vmatprep.subr.bf16.mxu1 %v4496_v37  ;;  %v4544_v16 = vld [vmem:[#allocation5 + $0x4c4] ss:$16 sps:$4 sm:$0xff]   ;;  %v4542_v18 = vld [vmem:[#allocation5 + $0x4c0] ss:$16 sps:$4 sm:$0xff]  }
  0x90   :  { %v4547_v17 = vld [vmem:[#allocation5 + $0x6c4] ss:$16 sps:$4 sm:$0xff]   ;;  %v4545_v19 = vld [vmem:[#allocation5 + $0x6c0] ss:$16 sps:$4 sm:$0xff]  }
  0x91   :  { %2378 = vmatpush2.bf16.msra.mxu0 %v4498_v38  ;;  %v4550_v20 = vld [vmem:[#allocation5 + $0x4a4] ss:$16 sps:$4 sm:$0xff]   ;;  %v4548_v22 = vld [vmem:[#allocation5 + $0x4a0] ss:$16 sps:$4 sm:$0xff]   ;;  %v184_v38 = vld [vmem:[%s5762_s1 + $0x108] sm:$0xff] }
  0x92   :  { %2431 = vmatpush2.bf16.msra.mxu1 %v4499_v39  ;;  %2379 = vmatprep.subr.bf16.mxu0 %v4500_v40  ;;  %v4553_v21 = vld [vmem:[#allocation5 + $0x6a4] ss:$16 sps:$4 sm:$0xff]   ;;  %v4551_v23 = vld [vmem:[#allocation5 + $0x6a0] ss:$16 sps:$4 sm:$0xff]   ;;  %v176_v39 = vld [vmem:[%s5762_s1 + $0xc8] sm:$0xff] }
  0x93   :  { %2432 = vmatprep.subr.bf16.mxu1 %v4502_v41  ;;  %v4556_v24 = vld [vmem:[#allocation5 + $0x484] ss:$16 sps:$4 sm:$0xff]   ;;  %v4554_v26 = vld [vmem:[#allocation5 + $0x480] ss:$16 sps:$4 sm:$0xff]  }
  0x94   :  { %v4559_v25 = vld [vmem:[#allocation5 + $0x684] ss:$16 sps:$4 sm:$0xff]   ;;  %v4557_v27 = vld [vmem:[#allocation5 + $0x680] ss:$16 sps:$4 sm:$0xff]  }
  0x95   :  { %2380 = vmatpush2.bf16.msra.mxu0 %v4504_v42  ;;  %v4562_v28 = vld [vmem:[#allocation5 + $0x464] ss:$16 sps:$4 sm:$0xff]   ;;  %v4560_v32 = vld [vmem:[#allocation5 + $0x460] ss:$16 sps:$4 sm:$0xff]  }
  0x96   :  { %2433 = vmatpush2.bf16.msra.mxu1 %v4505_v43  ;;  %2381 = vmatprep.subr.bf16.mxu0 %v4506_v44  ;;  %v4565_v29 = vld [vmem:[#allocation5 + $0x664] ss:$16 sps:$4 sm:$0xff]   ;;  %v4563_v34 = vld [vmem:[#allocation5 + $0x660] ss:$16 sps:$4 sm:$0xff]   ;;  %v186_v44 = vld [vmem:[%s5762_s1 + $0x118] sm:$0xff] }
  0x97   :  { %2434 = vmatprep.subr.bf16.mxu1 %v4508_v45  ;;  %v185_v31 = vld [vmem:[%s5762_s1 + $0x110] sm:$0xff]  ;;  %v187_v40 = vld [vmem:[%s5762_s1 + $0x120] sm:$0xff] }
  0x98   :  { %v5406_v33 = vpack.c.bf16 %v185_v31, %v174_v30  ;;  %v4568_v35 = vld [vmem:[#allocation5 + $0x444] ss:$16 sps:$4 sm:$0xff]   ;;  %v5423_v42 = vpack.c.bf16 %v187_v40, %v176_v39  ;;  %v4566_v45 = vld [vmem:[#allocation5 + $0x440] ss:$16 sps:$4 sm:$0xff]   ;;  %v168_v39 = vld [vmem:[%s5762_s1 + $0x88] sm:$0xff] }
  0x99   :  { %2382 = vmatpush2.bf16.msra.mxu0 %v4510_v50  ;;  %v4571_v36 = vld [vmem:[#allocation5 + $0x644] ss:$16 sps:$4 sm:$0xff]   ;;  %v4569_v46 = vld [vmem:[#allocation5 + $0x640] ss:$16 sps:$4 sm:$0xff]  }
  0x9a   :  { %2435 = vmatpush2.bf16.msra.mxu1 %v4511_v51  ;;  %2383 = vmatprep.subr.bf16.mxu0 %v4512_v52  ;;  %v173_v37 = vld [vmem:[%s5762_s1 + $0xb0] sm:$0xff]  ;;  %v175_v43 = vld [vmem:[%s5762_s1 + $0xc0] sm:$0xff] }
  0x9b   :  { %2436 = vmatprep.subr.bf16.mxu1 %v4514_v55  ;;  %v5421_v41 = vpack.c.bf16 %v184_v38, %v173_v37  ;;  %v5431_v47 = vpack.c.bf16 %v186_v44, %v175_v43  ;;  %v4574_v48 = vld [vmem:[#allocation5 + $0x424] ss:$16 sps:$4 sm:$0xff]   ;;  %v4572_v50 = vld [vmem:[#allocation5 + $0x420] ss:$16 sps:$4 sm:$0xff]   ;;  %v166_v37 = vld [vmem:[%s5762_s1 + $0x78] sm:$0xff] }
  0x9c   :  { %v4577_v49 = vld [vmem:[#allocation5 + $0x624] ss:$16 sps:$4 sm:$0xff]   ;;  %v4575_v51 = vld [vmem:[#allocation5 + $0x620] ss:$16 sps:$4 sm:$0xff]  }
  0x9d   :  { %2384 = vmatpush2.bf16.msra.mxu0 %v4516_v56  ;;  %v4580_v52 = vld [vmem:[#allocation5 + $0x404] ss:$16 sps:$4 sm:$0xff]   ;;  %v156_v56 = vld [vmem:[%s5762_s1 + $0x28] sm:$0xff]  ;;  %v4590_v6 = vld [vmem:[#allocation5 + $0x5c0] ss:$16 sps:$4 sm:$0xff]  }
  0x9e   :  { %2437 = vmatpush2.bf16.msra.mxu1 %v4517_v57  ;;  %2385 = vmatprep.subr.bf16.mxu0 %v4518_v58  ;;  %v4583_v55 = vld [vmem:[#allocation5 + $0x604] ss:$16 sps:$4 sm:$0xff]   ;;  %v158_v58 = vld [vmem:[%s5762_s1 + $0x38] sm:$0xff]  ;;  %v4593_v7 = vld [vmem:[#allocation5 + $0x7c0] ss:$16 sps:$4 sm:$0xff]  }
  0x9f   :  { %2438 = vmatprep.subr.bf16.mxu1 %v4520_v59  ;;  %v167_v57 = vld [vmem:[%s5762_s1 + $0x80] sm:$0xff]  ;;  %v169_v59 = vld [vmem:[%s5762_s1 + $0x90] sm:$0xff] }
  0xa0   :  { %v4598_v8 = vld [vmem:[#allocation5 + $0x5a4] ss:$16 sps:$4 sm:$0xff]  }
  0xa1   :  { %2386 = vmatpush2.bf16.msra.mxu0 %v4522_v60  ;;  %v4578_v60 = vld [vmem:[#allocation5 + $0x400] ss:$16 sps:$4 sm:$0xff]   ;;  %v4601_v9 = vld [vmem:[#allocation5 + $0x7a4] ss:$16 sps:$4 sm:$0xff]  }
  0xa2   :  { %2439 = vmatpush2.bf16.msra.mxu1 %v4523_v61  ;;  %2387 = vmatprep.subr.bf16.mxu0 %v4524_v62  ;;  %v4581_v61 = vld [vmem:[#allocation5 + $0x600] ss:$16 sps:$4 sm:$0xff]   ;;  %v4586_v62 = vld [vmem:[#allocation5 + $0x5e4] ss:$16 sps:$4 sm:$0xff]  }
  0xa3   :  { %2440 = vmatprep.subr.bf16.mxu1 %v4526_v63  ;;  %v5448_v63 = vpack.c.bf16 %v167_v57, %v156_v56  ;;  %v4628_v30 = vld [vmem:[#allocation5 + $0x504] ss:$16 sps:$4 sm:$0xff]  }
  0xa4   :  { %v4631_v31 = vld [vmem:[#allocation5 + $0x704] ss:$16 sps:$4 sm:$0xff]  }
  0xa5   :  { %2388 = vmatpush2.bf16.msra.mxu0 %v4528_v0  ;;  %v5450_v0 = vpack.c.bf16 %v169_v59, %v158_v58  ;;  %v157_v38 = vld [vmem:[%s5762_s1 + $0x30] sm:$0xff] }
  0xa6   :  { %2441 = vmatpush2.bf16.msra.mxu1 %v4529_v1  ;;  %2389 = vmatprep.subr.bf16.mxu0 %v4530_v2  ;;  %v4589_v1 = vld [vmem:[#allocation5 + $0x7e4] ss:$16 sps:$4 sm:$0xff]   ;;  %v4584_v2 = vld [vmem:[#allocation5 + $0x5e0] ss:$16 sps:$4 sm:$0xff]  }
  0xa7   :  { %2442 = vmatprep.subr.bf16.mxu1 %v4532_v3  ;;  %v4587_v3 = vld [vmem:[#allocation5 + $0x7e0] ss:$16 sps:$4 sm:$0xff]   ;;  %v4634_v40 = vld [vmem:[#allocation5 + $0x8e4] ss:$16 sps:$4 sm:$0xff]  }
  0xa8   :  { %v4642_v57 = vld [vmem:[#allocation5 + $0xac4] ss:$16 sps:$4 sm:$0xff]   ;;  %v4637_v58 = vld [vmem:[#allocation5 + $0x8c0] ss:$16 sps:$4 sm:$0xff]  }
  0xa9   :  { %2390 = vmatpush2.bf16.msra.mxu0 %v4534_v4  ;;  %v4592_v4 = vld [vmem:[#allocation5 + $0x5c4] ss:$16 sps:$4 sm:$0xff]   ;;  %v4640_v59 = vld [vmem:[#allocation5 + $0xac0] ss:$16 sps:$4 sm:$0xff]  }
  0xaa   :  { %2443 = vmatpush2.bf16.msra.mxu1 %v4535_v5  ;;  %2465 = vmatprep.subr.bf16.mxu0 %v4538_v10  ;;  %v4595_v5 = vld [vmem:[#allocation5 + $0x7c4] ss:$16 sps:$4 sm:$0xff]   ;;  %v4596_v10 = vld [vmem:[#allocation5 + $0x5a0] ss:$16 sps:$4 sm:$0xff]  }
  0xab   :  { %2518 = vmatprep.subr.bf16.mxu1 %v4541_v11  ;;  %v4599_v11 = vld [vmem:[#allocation5 + $0x7a0] ss:$16 sps:$4 sm:$0xff]  }
  0xac   :  { %2392 = vmatmul.mubr.bf16.vlgmr.msra.gmra.mxu0 %v5394_v12 }
  0xad   :  { %2445 = vmatmul.mubr.bf16.vlgmr.msra.gmra.mxu1 %v5396_v13  ;;  %2466 = vmatpush1.bf16.msra.mxu0 %v4536_v14  ;;  %v4604_v14 = vld [vmem:[#allocation5 + $0x584] ss:$16 sps:$4 sm:$0xff]  }
  0xae   :  { %2519 = vmatpush1.bf16.msra.mxu1 %v4539_v15  ;;  %2467 = vmatprep.subr.bf16.mxu0 %v4544_v16  ;;  %v4607_v15 = vld [vmem:[#allocation5 + $0x784] ss:$16 sps:$4 sm:$0xff]   ;;  %v4602_v16 = vld [vmem:[#allocation5 + $0x580] ss:$16 sps:$4 sm:$0xff]  }
  0xaf   :  { %2520 = vmatprep.subr.bf16.mxu1 %v4547_v17  ;;  %2401 = vmatprep.mubr.bf16.mxu0 %v5406_v33  ;;  %v4605_v17 = vld [vmem:[#allocation5 + $0x780] ss:$16 sps:$4 sm:$0xff]  }
  0xb0   :  { %2454 = vmatprep.mubr.bf16.mxu1 %v5423_v42 }
  0xb1   :  { %2468 = vmatpush1.bf16.msra.mxu0 %v4542_v18  ;;  %v4610_v18 = vld [vmem:[#allocation5 + $0x564] ss:$16 sps:$4 sm:$0xff]  }
  0xb2   :  { %2521 = vmatpush1.bf16.msra.mxu1 %v4545_v19  ;;  %2469 = vmatprep.subr.bf16.mxu0 %v4550_v20  ;;  %v4613_v19 = vld [vmem:[#allocation5 + $0x764] ss:$16 sps:$4 sm:$0xff]   ;;  %v4608_v20 = vld [vmem:[#allocation5 + $0x560] ss:$16 sps:$4 sm:$0xff]  }
  0xb3   :  { %2522 = vmatprep.subr.bf16.mxu1 %v4553_v21  ;;  %v4611_v21 = vld [vmem:[#allocation5 + $0x760] ss:$16 sps:$4 sm:$0xff]  }
  0xb4   :  { %2402 = vmatmul.mubr.bf16.gmra.mxu0 %v5421_v41 }
  0xb5   :  { %2470 = vmatpush1.bf16.msra.mxu0 %v4548_v22  ;;  %2455 = vmatmul.mubr.bf16.gmra.mxu1 %v5431_v47  ;;  %v4616_v22 = vld [vmem:[#allocation5 + $0x544] ss:$16 sps:$4 sm:$0xff]  }
  0xb6   :  { %2523 = vmatpush1.bf16.msra.mxu1 %v4551_v23  ;;  %2471 = vmatprep.subr.bf16.mxu0 %v4556_v24  ;;  %v4619_v23 = vld [vmem:[#allocation5 + $0x744] ss:$16 sps:$4 sm:$0xff]   ;;  %v4614_v24 = vld [vmem:[#allocation5 + $0x540] ss:$16 sps:$4 sm:$0xff]  }
  0xb7   :  { %2524 = vmatprep.subr.bf16.mxu1 %v4559_v25  ;;  %2497 = vmatprep.mubr.bf16.mxu0 %v5448_v63  ;;  %v4617_v25 = vld [vmem:[#allocation5 + $0x740] ss:$16 sps:$4 sm:$0xff]  }
  0xb8   :  { %2550 = vmatprep.mubr.bf16.mxu1 %v5450_v0 }
  0xb9   :  { %2472 = vmatpush1.bf16.msra.mxu0 %v4554_v26  ;;  %v4622_v26 = vld [vmem:[#allocation5 + $0x524] ss:$16 sps:$4 sm:$0xff]  }
  0xba   :  { %2525 = vmatpush1.bf16.msra.mxu1 %v4557_v27  ;;  %2473 = vmatprep.subr.bf16.mxu0 %v4562_v28  ;;  %v4625_v27 = vld [vmem:[#allocation5 + $0x724] ss:$16 sps:$4 sm:$0xff]   ;;  %v4620_v28 = vld [vmem:[#allocation5 + $0x520] ss:$16 sps:$4 sm:$0xff]  }
  0xbb   :  { %2526 = vmatprep.subr.bf16.mxu1 %v4565_v29  ;;  %v4623_v29 = vld [vmem:[#allocation5 + $0x720] ss:$16 sps:$4 sm:$0xff]  }
  0xbd   :  { %2474 = vmatpush1.bf16.msra.mxu0 %v4560_v32  ;;  %v4626_v32 = vld [vmem:[#allocation5 + $0x500] ss:$16 sps:$4 sm:$0xff]  }
  0xbe   :  { %2527 = vmatpush1.bf16.msra.mxu1 %v4563_v34  ;;  %2475 = vmatprep.subr.bf16.mxu0 %v4568_v35  ;;  %v4629_v34 = vld [vmem:[#allocation5 + $0x700] ss:$16 sps:$4 sm:$0xff]  }
  0xbf   :  { %2528 = vmatprep.subr.bf16.mxu1 %v4571_v36  ;;  %v155_v35 = vld [vmem:[%s5762_s1 + $0x20] sm:$0xff] }
  0xc0   :  { %v565_v36 = vld [vmem:[#allocation5 + $0xae0] sm:$0xff] }
  0xc1   :  { %2476 = vmatpush1.bf16.msra.mxu0 %v4566_v45  ;;  %v4267_v43 = vcombine.high %v565_v36, %v565_v36  ;;  %v4266_v44 = vcombine.low %v565_v36, %v565_v36  ;;  %v178_v45 = vld [vmem:[%s5762_s1 + $0xd8] sm:$0xff]  ;;  %v4676_v36 = vld [vmem:[#allocation5 + $0xa00] ss:$16 sps:$4 sm:$0xff]  }
  0xc2   :  { %2529 = vmatpush1.bf16.msra.mxu1 %v4569_v46  ;;  %2477 = vmatprep.subr.bf16.mxu0 %v4574_v48  ;;  %v189_v46 = vld [vmem:[%s5762_s1 + $0x130] sm:$0xff]  ;;  %v5472_v48 = vpack.c.bf16 %v166_v37, %v155_v35 }
  0xc3   :  { %2530 = vmatprep.subr.bf16.mxu1 %v4577_v49  ;;  %v5474_v49 = vpack.c.bf16 %v168_v39, %v157_v38  ;;  %v2348_v56 = vsel %vm2346_vm0, %v4266_v44, 0  ;;  %v4673_v35 = vld [vmem:[#allocation5 + $0x800] ss:$16 sps:$4 sm:$0xff]   ;;  %v172_v38 = vld [vmem:[%s5762_s1 + $0xa8] sm:$0xff]  ;;  %v4681_v39 = vld [vmem:[#allocation5 + $0x9e4] ss:$16 sps:$4 sm:$0xff]  }
  0xc4   :  { %v161_v37 = vld [vmem:[%s5762_s1 + $0x50] sm:$0xff] }
  0xc5   :  { %2478 = vmatpush1.bf16.msra.mxu0 %v4572_v50  ;;  %v180_v50 = vld [vmem:[%s5762_s1 + $0xe8] sm:$0xff]  ;;  %v5526_v44 = vpack.c.bf16 %v172_v38, %v161_v37 }
  0xc6   :  { %2531 = vmatpush1.bf16.msra.mxu1 %v4575_v51  ;;  %2479 = vmatprep.subr.bf16.mxu0 %v4580_v52  ;;  %v191_v51 = vld [vmem:[%s5762_s1 + $0x140] sm:$0xff]  ;;  %v4735_v37 = vld [vmem:[#allocation5 + $0x1cc] ss:$16 sps:$4 sm:$0xff]  }
  0xc7   :  { %2532 = vmatprep.subr.bf16.mxu1 %v4583_v55  ;;  %v4632_v52 = vld [vmem:[#allocation5 + $0x8e0] ss:$16 sps:$4 sm:$0xff]   ;;  %v4639_v55 = vld [vmem:[#allocation5 + $0x8c4] ss:$16 sps:$4 sm:$0xff]   ;;  %v4738_v38 = vld [vmem:[#allocation5 + $0x2cc] ss:$16 sps:$4 sm:$0xff]  }
  0xc9   :  { %2480 = vmatpush1.bf16.msra.mxu0 %v4578_v60  ;;  %v5484_v60 = vpack.c.bf16 %v189_v46, %v178_v45  ;;  %v4682_v45 = vld [vmem:[#allocation5 + $0xe8] ss:$16 sps:$4 sm:$0xff]   ;;  %v4687_v46 = vld [vmem:[#allocation5 + $0x9c4] ss:$16 sps:$4 sm:$0xff]  }
  0xca   :  { %2533 = vmatpush1.bf16.msra.mxu1 %v4581_v61  ;;  %2481 = vmatprep.subr.bf16.mxu0 %v4586_v62  ;;  %v177_v61 = vld [vmem:[%s5762_s1 + $0xd0] sm:$0xff]  ;;  %v5489_v62 = vpack.c.bf16 %v191_v51, %v180_v50  ;;  %v4690_v50 = vld [vmem:[#allocation5 + $0xcc] ss:$16 sps:$4 sm:$0xff]  }
  0xcb   :  { %2534 = vmatprep.subr.bf16.mxu1 %v4589_v1  ;;  %v188_v1 = vld [vmem:[%s5762_s1 + $0x128] sm:$0xff]  ;;  %v4685_v51 = vld [vmem:[#allocation5 + $0x9c0] ss:$16 sps:$4 sm:$0xff]  }
  0xcd   :  { %2482 = vmatpush2.bf16.msra.mxu0 %v4584_v2  ;;  %v4645_v2 = vld [vmem:[#allocation5 + $0x8a4] ss:$16 sps:$4 sm:$0xff]  }
  0xce   :  { %2535 = vmatpush2.bf16.msra.mxu1 %v4587_v3  ;;  %2483 = vmatprep.subr.bf16.mxu0 %v4592_v4  ;;  %v179_v3 = vld [vmem:[%s5762_s1 + $0xe0] sm:$0xff]  ;;  %v190_v4 = vld [vmem:[%s5762_s1 + $0x138] sm:$0xff] }
  0xcf   :  { %2536 = vmatprep.subr.bf16.mxu1 %v4595_v5  ;;  %v4648_v5 = vld [vmem:[#allocation5 + $0xaa4] ss:$16 sps:$4 sm:$0xff]  }
  0xd1   :  { %2484 = vmatpush2.bf16.msra.mxu0 %v4590_v6  ;;  %v5504_v6 = vpack.c.bf16 %v188_v1, %v177_v61  ;;  %v4694_v1 = vld [vmem:[#allocation5 + $0xa8] ss:$16 sps:$4 sm:$0xff]  }
  0xd2   :  { %2537 = vmatpush2.bf16.msra.mxu1 %v4593_v7  ;;  %2485 = vmatprep.subr.bf16.mxu0 %v4598_v8  ;;  %v4643_v7 = vld [vmem:[#allocation5 + $0x8a0] ss:$16 sps:$4 sm:$0xff]   ;;  %v5506_v8 = vpack.c.bf16 %v190_v4, %v179_v3  ;;  %v4702_v3 = vld [vmem:[#allocation5 + $0x8c] ss:$16 sps:$4 sm:$0xff]  }
  0xd3   :  { %2538 = vmatprep.subr.bf16.mxu1 %v4601_v9  ;;  %v4646_v9 = vld [vmem:[#allocation5 + $0xaa0] ss:$16 sps:$4 sm:$0xff]  }
  0xd4   :  { %v4697_v4 = vld [vmem:[#allocation5 + $0x980] ss:$16 sps:$4 sm:$0xff]  }
  0xd5   :  { %2486 = vmatpush2.bf16.msra.mxu0 %v4596_v10  ;;  %v4651_v10 = vld [vmem:[#allocation5 + $0x884] ss:$16 sps:$4 sm:$0xff]  }
  0xd6   :  { %2539 = vmatpush2.bf16.msra.mxu1 %v4599_v11  ;;  %2487 = vmatprep.subr.bf16.mxu0 %v4604_v14  ;;  %v4654_v11 = vld [vmem:[#allocation5 + $0xa84] ss:$16 sps:$4 sm:$0xff]   ;;  %v160_v14 = vld [vmem:[%s5762_s1 + $0x48] sm:$0xff] }
  0xd7   :  { %2540 = vmatprep.subr.bf16.mxu1 %v4607_v15  ;;  %v171_v15 = vld [vmem:[%s5762_s1 + $0xa0] sm:$0xff] }
  0xd9   :  { %2488 = vmatpush2.bf16.msra.mxu0 %v4602_v16  ;;  %v4649_v16 = vld [vmem:[#allocation5 + $0x880] ss:$16 sps:$4 sm:$0xff]  }
  0xda   :  { %2541 = vmatpush2.bf16.msra.mxu1 %v4605_v17  ;;  %2489 = vmatprep.subr.bf16.mxu0 %v4610_v18  ;;  %v5516_v17 = vpack.c.bf16 %v171_v15, %v160_v14  ;;  %v4652_v18 = vld [vmem:[#allocation5 + $0xa80] ss:$16 sps:$4 sm:$0xff]   ;;  %v4711_v14 = vld [vmem:[#allocation5 + $0x944] ss:$16 sps:$4 sm:$0xff]   ;;  %v4714_v15 = vld [vmem:[#allocation5 + $0x4c] ss:$16 sps:$4 sm:$0xff]  }
  0xdb   :  { %2542 = vmatprep.subr.bf16.mxu1 %v4613_v19  ;;  %v4657_v19 = vld [vmem:[#allocation5 + $0x864] ss:$16 sps:$4 sm:$0xff]  }
  0xdd   :  { %2490 = vmatpush2.bf16.msra.mxu0 %v4608_v20  ;;  %v4660_v20 = vld [vmem:[#allocation5 + $0xa64] ss:$16 sps:$4 sm:$0xff]  }
  0xde   :  { %2543 = vmatpush2.bf16.msra.mxu1 %v4611_v21  ;;  %2491 = vmatprep.subr.bf16.mxu0 %v4616_v22  ;;  %v5281_v21 = vmov 0   ;;  %v4655_v22 = vld [vmem:[#allocation5 + $0x860] ss:$16 sps:$4 sm:$0xff]  }
  0xdf   :  { %2544 = vmatprep.subr.bf16.mxu1 %v4619_v23  ;;  %v4658_v23 = vld [vmem:[#allocation5 + $0xa60] ss:$16 sps:$4 sm:$0xff]  }
  0xe1   :  { %2492 = vmatpush2.bf16.msra.mxu0 %v4614_v24  ;;  %v4663_v24 = vld [vmem:[#allocation5 + $0x844] ss:$16 sps:$4 sm:$0xff]  }
  0xe2   :  { %2545 = vmatpush2.bf16.msra.mxu1 %v4617_v25  ;;  %2493 = vmatprep.subr.bf16.mxu0 %v4622_v26  ;;  %v4666_v25 = vld [vmem:[#allocation5 + $0xa44] ss:$16 sps:$4 sm:$0xff]   ;;  %v4661_v26 = vld [vmem:[#allocation5 + $0x840] ss:$16 sps:$4 sm:$0xff]  }
  0xe3   :  { %2546 = vmatprep.subr.bf16.mxu1 %v4625_v27  ;;  %v4664_v27 = vld [vmem:[#allocation5 + $0xa40] ss:$16 sps:$4 sm:$0xff]  }
  0xe5   :  { %2494 = vmatpush2.bf16.msra.mxu0 %v4620_v28  ;;  %v4669_v28 = vld [vmem:[#allocation5 + $0x824] ss:$16 sps:$4 sm:$0xff]  }
  0xe6   :  { %2547 = vmatpush2.bf16.msra.mxu1 %v4623_v29  ;;  %2495 = vmatprep.subr.bf16.mxu0 %v4628_v30  ;;  %v4672_v29 = vld [vmem:[#allocation5 + $0xa24] ss:$16 sps:$4 sm:$0xff]   ;;  %v4667_v30 = vld [vmem:[#allocation5 + $0x820] ss:$16 sps:$4 sm:$0xff]  }
  0xe7   :  { %2548 = vmatprep.subr.bf16.mxu1 %v4631_v31  ;;  %v4670_v31 = vld [vmem:[#allocation5 + $0xa20] ss:$16 sps:$4 sm:$0xff]  }
  0xe9   :  { %2496 = vmatpush2.bf16.msra.mxu0 %v4626_v32  ;;  %v4675_v32 = vld [vmem:[#allocation5 + $0x804] ss:$16 sps:$4 sm:$0xff]  }
  0xea   :  { %2549 = vmatpush2.bf16.msra.mxu1 %v4629_v34  ;;  %2571 = vmatprep.subr.bf16.mxu0 %v4634_v40  ;;  %v4678_v34 = vld [vmem:[#allocation5 + $0xa04] ss:$16 sps:$4 sm:$0xff]   ;;  %v4684_v40 = vld [vmem:[#allocation5 + $0xec] ss:$16 sps:$4 sm:$0xff]  }
  0xeb   :  { %4270 = vmatprep.subr.msk.bf16.mxu1 %vm2346_vm0, %v4267_v43  ;;  %v4679_v43 = vld [vmem:[#allocation5 + $0x9e0] ss:$16 sps:$4 sm:$0xff]  }
  0xec   :  { %2498 = vmatmul.mubr.bf16.vlgmr.msra.gmra.mxu0 %v5472_v48 }
  0xed   :  { %2551 = vmatmul.mubr.bf16.vlgmr.msra.gmra.mxu1 %v5474_v49  ;;  %2572 = vmatpush1.bf16.msra.mxu0 %v4632_v52  ;;  %v4688_v52 = vld [vmem:[#allocation5 + $0xc8] ss:$16 sps:$4 sm:$0xff]  }
  0xee   :  { %2625 = vmatpush1.bf16.msra.mxu1 %v2348_v56  ;;  %2573 = vmatprep.subr.bf16.mxu0 %v4639_v55  ;;  %v183_v55 = vld [vmem:[%s5762_s1 + $0x100] sm:$0xff]  ;;  %v194_v56 = vld [vmem:[%s5762_s1 + $0x158] sm:$0xff] }
  0xef   :  { %2626 = vmatprep.subr.bf16.mxu1 %v4642_v57  ;;  %2507 = vmatprep.mubr.bf16.mxu0 %v5484_v60  ;;  %v4693_v57 = vld [vmem:[#allocation5 + $0x9a4] ss:$16 sps:$4 sm:$0xff]   ;;  %v5537_v61 = vpack.c.bf16 %v194_v56, %v183_v55  ;;  %v4739_v55 = vld [vmem:[#allocation5 + $0x1a8] ss:$16 sps:$4 sm:$0xff]  }
  0xf0   :  { %2560 = vmatprep.mubr.bf16.mxu1 %v5489_v62  ;;  %v4742_v56 = vld [vmem:[#allocation5 + $0x2a8] ss:$16 sps:$4 sm:$0xff]  }
  0xf1   :  { %2574 = vmatpush1.bf16.msra.mxu0 %v4637_v58  ;;  %v4696_v58 = vld [vmem:[#allocation5 + $0xac] ss:$16 sps:$4 sm:$0xff]  }
  0xf2   :  { %2627 = vmatpush1.bf16.msra.mxu1 %v4640_v59  ;;  %2575 = vmatprep.subr.bf16.mxu0 %v4645_v2  ;;  %v4691_v59 = vld [vmem:[#allocation5 + $0x9a0] ss:$16 sps:$4 sm:$0xff]   ;;  %v4699_v2 = vld [vmem:[#allocation5 + $0x984] ss:$16 sps:$4 sm:$0xff]  }
  0xf3   :  { %2628 = vmatprep.subr.bf16.mxu1 %v4648_v5  ;;  %v4700_v5 = vld [vmem:[#allocation5 + $0x88] ss:$16 sps:$4 sm:$0xff]  }
  0xf4   :  { %2508 = vmatmul.mubr.bf16.gmra.mxu0 %v5504_v6 }
  0xf5   :  { %2561 = vmatmul.mubr.bf16.gmra.mxu1 %v5506_v8  ;;  %2576 = vmatpush1.bf16.msra.mxu0 %v4643_v7  ;;  %v4705_v7 = vld [vmem:[#allocation5 + $0x964] ss:$16 sps:$4 sm:$0xff]  }
  0xf6   :  { %2629 = vmatpush1.bf16.msra.mxu1 %v4646_v9  ;;  %2577 = vmatprep.subr.bf16.mxu0 %v4651_v10  ;;  %v4708_v9 = vld [vmem:[#allocation5 + $0x6c] ss:$16 sps:$4 sm:$0xff]   ;;  %v4703_v10 = vld [vmem:[#allocation5 + $0x960] ss:$16 sps:$4 sm:$0xff]  }
  0xf7   :  { %2630 = vmatprep.subr.bf16.mxu1 %v4654_v11  ;;  %2656 = vmatprep.mubr.bf16.mxu1 %v5281_v21  ;;  %v4706_v11 = vld [vmem:[#allocation5 + $0x68] ss:$16 sps:$4 sm:$0xff]  }
  0xf8   :  { %2603 = vmatprep.mubr.bf16.mxu0 %v5516_v17 }
  0xf9   :  { %2578 = vmatpush1.bf16.msra.mxu0 %v4649_v16  ;;  %v4709_v16 = vld [vmem:[#allocation5 + $0x940] ss:$16 sps:$4 sm:$0xff]  }
  0xfa   :  { %2631 = vmatpush1.bf16.msra.mxu1 %v4652_v18  ;;  %2579 = vmatprep.subr.bf16.mxu0 %v4657_v19  ;;  %v4712_v18 = vld [vmem:[#allocation5 + $0x48] ss:$16 sps:$4 sm:$0xff]   ;;  %v4717_v19 = vld [vmem:[#allocation5 + $0x924] ss:$16 sps:$4 sm:$0xff]  }
  0xfb   :  { %2632 = vmatprep.subr.bf16.mxu1 %v4660_v20  ;;  %v4720_v20 = vld [vmem:[#allocation5 + $0x2c] ss:$16 sps:$4 sm:$0xff]  }
  0xfd   :  { %2580 = vmatpush1.bf16.msra.mxu0 %v4655_v22  ;;  %v4715_v22 = vld [vmem:[#allocation5 + $0x920] ss:$16 sps:$4 sm:$0xff]  }
  0xfe   :  { %2633 = vmatpush1.bf16.msra.mxu1 %v4658_v23  ;;  %2581 = vmatprep.subr.bf16.mxu0 %v4663_v24  ;;  %v4723_v23 = vld [vmem:[#allocation5 + $0x904] ss:$16 sps:$4 sm:$0xff]   ;;  %v4726_v24 = vld [vmem:[#allocation5 + $0xc] ss:$16 sps:$4 sm:$0xff]  }
  0xff   :  { %2634 = vmatprep.subr.bf16.mxu1 %v4666_v25  ;;  %v4721_v25 = vld [vmem:[#allocation5 + $0x900] ss:$16 sps:$4 sm:$0xff]  }
 0x101   :  { %2582 = vmatpush1.bf16.msra.mxu0 %v4661_v26  ;;  %v4724_v26 = vld [vmem:[#allocation5 + $0x8] ss:$16 sps:$4 sm:$0xff]  }
 0x102   :  { %2635 = vmatpush1.bf16.msra.mxu1 %v4664_v27  ;;  %2583 = vmatprep.subr.bf16.mxu0 %v4669_v28  ;;  %v159_v27 = vld [vmem:[%s5762_s1 + $0x40] sm:$0xff]  ;;  %v170_v28 = vld [vmem:[%s5762_s1 + $0x98] sm:$0xff] }
 0x103   :  { %2636 = vmatprep.subr.bf16.mxu1 %v4672_v29  ;;  %v4729_v29 = vld [vmem:[#allocation5 + $0x1ec] ss:$16 sps:$4 sm:$0xff]  }
 0x105   :  { %2584 = vmatpush1.bf16.msra.mxu0 %v4667_v30  ;;  %v4732_v30 = vld [vmem:[#allocation5 + $0x2ec] ss:$16 sps:$4 sm:$0xff]  }
 0x106   :  { %2637 = vmatpush1.bf16.msra.mxu1 %v4670_v31  ;;  %2585 = vmatprep.subr.bf16.mxu0 %v4675_v32  ;;  %v182_v31 = vld [vmem:[%s5762_s1 + $0xf8] sm:$0xff]  ;;  %v5551_v32 = vpack.c.bf16 %v170_v28, %v159_v27 }
 0x107   :  { %2638 = vmatprep.subr.bf16.mxu1 %v4678_v34  ;;  %v193_v34 = vld [vmem:[%s5762_s1 + $0x150] sm:$0xff]  ;;  %v4786_v27 = vld [vmem:[#allocation5 + $0x4cc] ss:$16 sps:$4 sm:$0xff]   ;;  %v4781_v28 = vld [vmem:[#allocation5 + $0x3c8] ss:$16 sps:$4 sm:$0xff]  }
 0x109   :  { %2586 = vmatpush1.bf16.msra.mxu0 %v4673_v35  ;;  %v4727_v35 = vld [vmem:[#allocation5 + $0x1e8] ss:$16 sps:$4 sm:$0xff]  }
 0x10a   :  { %2639 = vmatpush1.bf16.msra.mxu1 %v4676_v36  ;;  %2587 = vmatprep.subr.bf16.mxu0 %v4681_v39  ;;  %v4730_v36 = vld [vmem:[#allocation5 + $0x2e8] ss:$16 sps:$4 sm:$0xff]  }
 0x10b   :  { %2677 = vmatprep.subr.bf16.mxu1 %v4684_v40  ;;  %v4733_v39 = vld [vmem:[#allocation5 + $0x1c8] ss:$16 sps:$4 sm:$0xff]   ;;  %v5556_v40 = vpack.c.bf16 %v193_v34, %v182_v31  ;;  %v4792_v31 = vld [vmem:[#allocation5 + $0x4ac] ss:$16 sps:$4 sm:$0xff]  }
 0x10c   :  { %v4787_v34 = vld [vmem:[#allocation5 + $0x3a8] ss:$16 sps:$4 sm:$0xff]  }
 0x10d   :  { %4271 = vmatmul.mubr.msk.bf16.vlgmr.msra.gmra.mxu1 %vm2339_vm1, %v5526_v44  ;;  %2588 = vmatpush2.bf16.msra.mxu0 %v4679_v43  ;;  %v4736_v43 = vld [vmem:[#allocation5 + $0x2c8] ss:$16 sps:$4 sm:$0xff]  }
 0x10e   :  { %2678 = vmatpush1.bf16.msra.mxu1 %v4682_v45  ;;  %2589 = vmatprep.subr.bf16.mxu0 %v4687_v46  ;;  %v181_v45 = vld [vmem:[%s5762_s1 + $0xf0] sm:$0xff]  ;;  %v192_v46 = vld [vmem:[%s5762_s1 + $0x148] sm:$0xff]  ;;  %s5677_s1 = sld [smem:[#allocation2]] }
 0x10f   :  { %2679 = vmatprep.subr.bf16.mxu1 %v4690_v50  ;;  %2666 = vmatprep.mubr.bf16.mxu1 %v5281_v21  ;;  %v4741_v50 = vld [vmem:[#allocation5 + $0x1ac] ss:$16 sps:$4 sm:$0xff]  }
 0x111   :  { %2590 = vmatpush2.bf16.msra.mxu0 %v4685_v51  ;;  %v4744_v51 = vld [vmem:[#allocation5 + $0x2ac] ss:$16 sps:$4 sm:$0xff]  }
 0x112   :  { %2680 = vmatpush1.bf16.msra.mxu1 %v4688_v52  ;;  %2591 = vmatprep.subr.bf16.mxu0 %v4693_v57  ;;  %v5566_v52 = vpack.c.bf16 %v192_v46, %v181_v45  ;;  %v4747_v57 = vld [vmem:[#allocation5 + $0x18c] ss:$16 sps:$4 sm:$0xff]   ;;  %v4802_v45 = vld [vmem:[#allocation5 + $0x468] ss:$16 sps:$4 sm:$0xff]  }
 0x113   :  { %2681 = vmatprep.subr.bf16.mxu1 %v4696_v58  ;;  %v4750_v58 = vld [vmem:[#allocation5 + $0x28c] ss:$16 sps:$4 sm:$0xff]  }
 0x114   :  { %v4807_v46 = vld [vmem:[#allocation5 + $0x34c] ss:$16 sps:$4 sm:$0xff]  }
 0x115   :  { %4272 = vmatmul.mubr.msk.bf16.gmra.mxu1 %vm2339_vm1, %v5537_v61  ;;  %2592 = vmatpush2.bf16.msra.mxu0 %v4691_v59  ;;  %v4745_v59 = vld [vmem:[#allocation5 + $0x188] ss:$16 sps:$4 sm:$0xff]  }
 0x116   :  { %2682 = vmatpush1.bf16.msra.mxu1 %v4694_v1  ;;  %2593 = vmatprep.subr.bf16.mxu0 %v4699_v2  ;;  %v4748_v1 = vld [vmem:[#allocation5 + $0x288] ss:$16 sps:$4 sm:$0xff]   ;;  %v4753_v2 = vld [vmem:[#allocation5 + $0x16c] ss:$16 sps:$4 sm:$0xff]  }
 0x117   :  { %2683 = vmatprep.subr.bf16.mxu1 %v4702_v3  ;;  %2709 = vmatprep.mubr.bf16.mxu1 %v5376_v53  ;;  %v4718_v53 = vld [vmem:[#allocation5 + $0x28] ss:$16 sps:$4 sm:$0xff]   ;;  %v4756_v3 = vld [vmem:[#allocation5 + $0x26c] ss:$16 sps:$4 sm:$0xff]  }
 0x119   :  { %2594 = vmatpush2.bf16.msra.mxu0 %v4697_v4  ;;  %v4751_v4 = vld [vmem:[#allocation5 + $0x168] ss:$16 sps:$4 sm:$0xff]  }
 0x11a   :  { %2684 = vmatpush1.bf16.msra.mxu1 %v4700_v5  ;;  %2595 = vmatprep.subr.bf16.mxu0 %v4705_v7  ;;  %v4754_v5 = vld [vmem:[#allocation5 + $0x268] ss:$16 sps:$4 sm:$0xff]   ;;  %v4759_v7 = vld [vmem:[#allocation5 + $0x14c] ss:$16 sps:$4 sm:$0xff]  }
 0x11b   :  { %2685 = vmatprep.subr.bf16.mxu1 %v4708_v9  ;;  %v4762_v9 = vld [vmem:[#allocation5 + $0x24c] ss:$16 sps:$4 sm:$0xff]  }
 0x11d   :  { %2596 = vmatpush2.bf16.msra.mxu0 %v4703_v10  ;;  %v4757_v10 = vld [vmem:[#allocation5 + $0x148] ss:$16 sps:$4 sm:$0xff]  }
 0x11e   :  { %2686 = vmatpush1.bf16.msra.mxu1 %v4706_v11  ;;  %2597 = vmatprep.subr.bf16.mxu0 %v4711_v14  ;;  %v4760_v11 = vld [vmem:[#allocation5 + $0x248] ss:$16 sps:$4 sm:$0xff]   ;;  %v4765_v14 = vld [vmem:[#allocation5 + $0x12c] ss:$16 sps:$4 sm:$0xff]  }
 0x11f   :  { %2687 = vmatprep.subr.bf16.mxu1 %v4714_v15  ;;  %v4768_v15 = vld [vmem:[#allocation5 + $0x22c] ss:$16 sps:$4 sm:$0xff]  }
 0x121   :  { %2598 = vmatpush2.bf16.msra.mxu0 %v4709_v16  ;;  %v4763_v16 = vld [vmem:[#allocation5 + $0x128] ss:$16 sps:$4 sm:$0xff]  }
 0x122   :  { %2688 = vmatpush1.bf16.msra.mxu1 %v4712_v18  ;;  %2599 = vmatprep.subr.bf16.mxu0 %v4717_v19  ;;  %v4771_v18 = vld [vmem:[#allocation5 + $0x10c] ss:$16 sps:$4 sm:$0xff]  }
 0x123   :  { %2689 = vmatprep.subr.bf16.mxu1 %v4720_v20  ;;  %v4774_v19 = vld [vmem:[#allocation5 + $0x20c] ss:$16 sps:$4 sm:$0xff]   ;;  %v4769_v20 = vld [vmem:[#allocation5 + $0x108] ss:$16 sps:$4 sm:$0xff]  }
 0x125   :  { %2600 = vmatpush2.bf16.msra.mxu0 %v4715_v22  ;;  %v4772_v22 = vld [vmem:[#allocation5 + $0x208] ss:$16 sps:$4 sm:$0xff]  }
 0x126   :  { %2690 = vmatpush1.bf16.msra.mxu1 %v4718_v53  ;;  %2601 = vmatprep.subr.bf16.mxu0 %v4723_v23  ;;  %v4777_v53 = vld [vmem:[#allocation5 + $0x3ec] ss:$16 sps:$4 sm:$0xff]  }
 0x127   :  { %2691 = vmatprep.subr.bf16.mxu1 %v4726_v24  ;;  %v4780_v23 = vld [vmem:[#allocation5 + $0x4ec] ss:$16 sps:$4 sm:$0xff]   ;;  %v4775_v24 = vld [vmem:[#allocation5 + $0x3e8] ss:$16 sps:$4 sm:$0xff]  }
 0x129   :  { %2602 = vmatpush2.bf16.msra.mxu0 %v4721_v25  ;;  %v4778_v25 = vld [vmem:[#allocation5 + $0x4e8] ss:$16 sps:$4 sm:$0xff]  }
 0x12a   :  { %2692 = vmatpush1.bf16.msra.mxu1 %v4724_v26  ;;  %2730 = vmatprep.subr.bf16.mxu0 %v4732_v30  ;;  %v4783_v26 = vld [vmem:[#allocation5 + $0x3cc] ss:$16 sps:$4 sm:$0xff]  }
 0x12b   :  { %2693 = vmatprep.subr.bf16.mxu1 %v4729_v29  ;;  %v4784_v29 = vld [vmem:[#allocation5 + $0x4c8] ss:$16 sps:$4 sm:$0xff]   ;;  %v4789_v30 = vld [vmem:[#allocation5 + $0x3ac] ss:$16 sps:$4 sm:$0xff]  }
 0x12c   :  { %2604 = vmatmul.mubr.bf16.vlgmr.msra.gmra.mxu0 %v5551_v32 }
 0x12d   :  { %2731 = vmatpush1.bf16.msra.mxu0 %v4730_v36  ;;  %2613 = vmatprep.mubr.bf16.mxu0 %v5556_v40  ;;  %v4795_v36 = vld [vmem:[#allocation5 + $0x38c] ss:$16 sps:$4 sm:$0xff]  }
 0x12e   :  { %2694 = vmatpush2.bf16.msra.mxu1 %v4727_v35  ;;  %2732 = vmatprep.subr.bf16.mxu0 %v4738_v38  ;;  %v4790_v35 = vld [vmem:[#allocation5 + $0x4a8] ss:$16 sps:$4 sm:$0xff]  }
 0x12f   :  { %2695 = vmatprep.subr.bf16.mxu1 %v4735_v37  ;;  %v4798_v37 = vld [vmem:[#allocation5 + $0x48c] ss:$16 sps:$4 sm:$0xff]   ;;  %v4793_v38 = vld [vmem:[#allocation5 + $0x388] ss:$16 sps:$4 sm:$0xff]  }
 0x131   :  { %2733 = vmatpush1.bf16.msra.mxu0 %v4736_v43  ;;  %v4804_v43 = vld [vmem:[#allocation5 + $0x46c] ss:$16 sps:$4 sm:$0xff]  }
 0x132   :  { %2696 = vmatpush2.bf16.msra.mxu1 %v4733_v39  ;;  %2734 = vmatprep.subr.bf16.mxu0 %v4744_v51  ;;  %v4801_v39 = vld [vmem:[#allocation5 + $0x36c] ss:$16 sps:$4 sm:$0xff]   ;;  %v4805_v51 = vld [vmem:[#allocation5 + $0x348] ss:$16 sps:$4 sm:$0xff]  }
 0x133   :  { %2697 = vmatprep.subr.bf16.mxu1 %v4741_v50  ;;  %v4810_v50 = vld [vmem:[#allocation5 + $0x44c] ss:$16 sps:$4 sm:$0xff]  }
 0x134   :  { %2614 = vmatmul.mubr.bf16.gmra.mxu0 %v5566_v52 }
 0x135   :  { %2735 = vmatpush1.bf16.msra.mxu0 %v4742_v56  ;;  %2762 = vmatprep.mubr.bf16.mxu0 %v5378_v54  ;;  %v4766_v54 = vld [vmem:[#allocation5 + $0x228] ss:$16 sps:$4 sm:$0xff]   ;;  %v4816_v56 = vld [vmem:[#allocation5 + $0x42c] ss:$16 sps:$4 sm:$0xff]  }
 0x136   :  { %2698 = vmatpush2.bf16.msra.mxu1 %v4739_v55  ;;  %2736 = vmatprep.subr.bf16.mxu0 %v4750_v58  ;;  %v4813_v55 = vld [vmem:[#allocation5 + $0x32c] ss:$16 sps:$4 sm:$0xff]  }
 0x137   :  { %2699 = vmatprep.subr.bf16.mxu1 %v4747_v57  ;;  %v4811_v57 = vld [vmem:[#allocation5 + $0x328] ss:$16 sps:$4 sm:$0xff]   ;;  %v4819_v58 = vld [vmem:[#allocation5 + $0x30c] ss:$16 sps:$4 sm:$0xff]  }
 0x139   :  { %2737 = vmatpush1.bf16.msra.mxu0 %v4748_v1  ;;  %v4817_v1 = vld [vmem:[#allocation5 + $0x308] ss:$16 sps:$4 sm:$0xff]  }
 0x13a   :  { %2700 = vmatpush2.bf16.msra.mxu1 %v4745_v59  ;;  %2738 = vmatprep.subr.bf16.mxu0 %v4756_v3  ;;  %v4822_v59 = vld [vmem:[#allocation5 + $0x40c] ss:$16 sps:$4 sm:$0xff]  }
 0x13b   :  { %2701 = vmatprep.subr.bf16.mxu1 %v4753_v2  ;;  %v4820_v2 = vld [vmem:[#allocation5 + $0x408] ss:$16 sps:$4 sm:$0xff]   ;;  %v4825_v3 = vld [vmem:[#allocation5 + $0x5ec] ss:$16 sps:$4 sm:$0xff]  }
 0x13d   :  { %2739 = vmatpush1.bf16.msra.mxu0 %v4754_v5  ;;  %v4823_v5 = vld [vmem:[#allocation5 + $0x5e8] ss:$16 sps:$4 sm:$0xff]  }
 0x13e   :  { %2702 = vmatpush2.bf16.msra.mxu1 %v4751_v4  ;;  %2740 = vmatprep.subr.bf16.mxu0 %v4762_v9  ;;  %v4828_v4 = vld [vmem:[#allocation5 + $0x6ec] ss:$16 sps:$4 sm:$0xff]  }
 0x13f   :  { %2703 = vmatprep.subr.bf16.mxu1 %v4759_v7  ;;  %v4826_v7 = vld [vmem:[#allocation5 + $0x6e8] ss:$16 sps:$4 sm:$0xff]   ;;  %v4831_v9 = vld [vmem:[#allocation5 + $0x5cc] ss:$16 sps:$4 sm:$0xff]  }
 0x141   :  { %2741 = vmatpush1.bf16.msra.mxu0 %v4760_v11  ;;  %v4829_v11 = vld [vmem:[#allocation5 + $0x5c8] ss:$16 sps:$4 sm:$0xff]  }
 0x142   :  { %2704 = vmatpush2.bf16.msra.mxu1 %v4757_v10  ;;  %2742 = vmatprep.subr.bf16.mxu0 %v4768_v15  ;;  %v4834_v10 = vld [vmem:[#allocation5 + $0x6cc] ss:$16 sps:$4 sm:$0xff]  }
 0x143   :  { %2705 = vmatprep.subr.bf16.mxu1 %v4765_v14  ;;  %v4832_v14 = vld [vmem:[#allocation5 + $0x6c8] ss:$16 sps:$4 sm:$0xff]   ;;  %v4837_v15 = vld [vmem:[#allocation5 + $0x5ac] ss:$16 sps:$4 sm:$0xff]  }
 0x145   :  { %2743 = vmatpush1.bf16.msra.mxu0 %v4766_v54  ;;  %v4835_v54 = vld [vmem:[#allocation5 + $0x5a8] ss:$16 sps:$4 sm:$0xff]  }
 0x146   :  { %2706 = vmatpush2.bf16.msra.mxu1 %v4763_v16  ;;  %2744 = vmatprep.subr.bf16.mxu0 %v4774_v19  ;;  %v4840_v16 = vld [vmem:[#allocation5 + $0x6ac] ss:$16 sps:$4 sm:$0xff]  }
 0x147   :  { %2707 = vmatprep.subr.bf16.mxu1 %v4771_v18  ;;  %v4838_v18 = vld [vmem:[#allocation5 + $0x6a8] ss:$16 sps:$4 sm:$0xff]   ;;  %v4843_v19 = vld [vmem:[#allocation5 + $0x58c] ss:$16 sps:$4 sm:$0xff]  }
 0x149   :  { %2745 = vmatpush1.bf16.msra.mxu0 %v4772_v22  ;;  %v4841_v22 = vld [vmem:[#allocation5 + $0x588] ss:$16 sps:$4 sm:$0xff]  }
 0x14a   :  { %2708 = vmatpush2.bf16.msra.mxu1 %v4769_v20  ;;  %2746 = vmatprep.subr.bf16.mxu0 %v4777_v53  ;;  %v4846_v20 = vld [vmem:[#allocation5 + $0x68c] ss:$16 sps:$4 sm:$0xff]   ;;  %v4844_v53 = vld [vmem:[#allocation5 + $0x688] ss:$16 sps:$4 sm:$0xff]  }
 0x14b   :  { %2783 = vmatprep.subr.bf16.mxu1 %v4780_v23  ;;  %v4852_v23 = vld [vmem:[#allocation5 + $0x66c] ss:$16 sps:$4 sm:$0xff]  }
 0x14d   :  { %2710 = vmatmul.mubr.bf16.vlgmr.msra.gmra.mxu1 %v5394_v12  ;;  %2747 = vmatpush2.bf16.msra.mxu0 %v4775_v24  ;;  %v4796_v12 = vld [vmem:[#allocation5 + $0x488] ss:$16 sps:$4 sm:$0xff]  }
 0x14e   :  { %2784 = vmatpush1.bf16.msra.mxu1 %v4778_v25  ;;  %2748 = vmatprep.subr.bf16.mxu0 %v4783_v26  ;;  %v4847_v24 = vld [vmem:[#allocation5 + $0x568] ss:$16 sps:$4 sm:$0xff]   ;;  %v4858_v26 = vld [vmem:[#allocation5 + $0x64c] ss:$16 sps:$4 sm:$0xff]  }
 0x14f   :  { %2785 = vmatprep.subr.bf16.mxu1 %v4786_v27  ;;  %2719 = vmatprep.mubr.bf16.mxu1 %v5406_v33  ;;  %v4799_v33 = vld [vmem:[#allocation5 + $0x368] ss:$16 sps:$4 sm:$0xff]  }
 0x150   :  { %v4850_v25 = vld [vmem:[#allocation5 + $0x668] ss:$16 sps:$4 sm:$0xff]  }
 0x151   :  { %2749 = vmatpush2.bf16.msra.mxu0 %v4781_v28  ;;  %v4853_v27 = vld [vmem:[#allocation5 + $0x548] ss:$16 sps:$4 sm:$0xff]  }
 0x152   :  { %2786 = vmatpush1.bf16.msra.mxu1 %v4784_v29  ;;  %2750 = vmatprep.subr.bf16.mxu0 %v4789_v30  ;;  %v4856_v28 = vld [vmem:[#allocation5 + $0x648] ss:$16 sps:$4 sm:$0xff]   ;;  %v4861_v29 = vld [vmem:[#allocation5 + $0x52c] ss:$16 sps:$4 sm:$0xff]  }
 0x153   :  { %2787 = vmatprep.subr.bf16.mxu1 %v4792_v31  ;;  %v4864_v30 = vld [vmem:[#allocation5 + $0x62c] ss:$16 sps:$4 sm:$0xff]   ;;  %v4862_v31 = vld [vmem:[#allocation5 + $0x628] ss:$16 sps:$4 sm:$0xff]  }
 0x155   :  { %2720 = vmatmul.mubr.bf16.gmra.mxu1 %v5421_v41  ;;  %2751 = vmatpush2.bf16.msra.mxu0 %v4787_v34  ;;  %v4808_v41 = vld [vmem:[#allocation5 + $0x448] ss:$16 sps:$4 sm:$0xff]   ;;  %v4867_v34 = vld [vmem:[#allocation5 + $0x50c] ss:$16 sps:$4 sm:$0xff]  }
 0x156   :  { %2788 = vmatpush1.bf16.msra.mxu1 %v4790_v35  ;;  %2752 = vmatprep.subr.bf16.mxu0 %v4795_v36  ;;  %v4865_v35 = vld [vmem:[#allocation5 + $0x508] ss:$16 sps:$4 sm:$0xff]  }
 0x157   :  { %2789 = vmatprep.subr.bf16.mxu1 %v4798_v37  ;;  %2815 = vmatprep.mubr.bf16.mxu1 %v5448_v63  ;;  %v4814_v63 = vld [vmem:[#allocation5 + $0x428] ss:$16 sps:$4 sm:$0xff]   ;;  %v4873_v37 = vld [vmem:[#allocation5 + $0x7ec] ss:$16 sps:$4 sm:$0xff]  }
 0x158   :  { %v4868_v36 = vld [vmem:[#allocation5 + $0x608] ss:$16 sps:$4 sm:$0xff]  }
 0x159   :  { %2753 = vmatpush2.bf16.msra.mxu0 %v4793_v38  ;;  %v4876_v38 = vld [vmem:[#allocation5 + $0x8ec] ss:$16 sps:$4 sm:$0xff]  }
 0x15a   :  { %2790 = vmatpush1.bf16.msra.mxu1 %v4796_v12  ;;  %2754 = vmatprep.subr.bf16.mxu0 %v4801_v39  ;;  %v4871_v12 = vld [vmem:[#allocation5 + $0x7e8] ss:$16 sps:$4 sm:$0xff]  }
 0x15b   :  { %2791 = vmatprep.subr.bf16.mxu1 %v4804_v43  ;;  %v4874_v39 = vld [vmem:[#allocation5 + $0x8e8] ss:$16 sps:$4 sm:$0xff]   ;;  %v4879_v43 = vld [vmem:[#allocation5 + $0x7cc] ss:$16 sps:$4 sm:$0xff]  }
 0x15d   :  { %2755 = vmatpush2.bf16.msra.mxu0 %v4799_v33  ;;  %v4882_v33 = vld [vmem:[#allocation5 + $0x8cc] ss:$16 sps:$4 sm:$0xff]  }
 0x15e   :  { %2792 = vmatpush1.bf16.msra.mxu1 %v4802_v45  ;;  %2756 = vmatprep.subr.bf16.mxu0 %v4807_v46  ;;  %v4877_v45 = vld [vmem:[#allocation5 + $0x7c8] ss:$16 sps:$4 sm:$0xff]  }
 0x15f   :  { %2793 = vmatprep.subr.bf16.mxu1 %v4810_v50  ;;  %v4880_v46 = vld [vmem:[#allocation5 + $0x8c8] ss:$16 sps:$4 sm:$0xff]   ;;  %v4885_v50 = vld [vmem:[#allocation5 + $0x7ac] ss:$16 sps:$4 sm:$0xff]  }
 0x161   :  { %2757 = vmatpush2.bf16.msra.mxu0 %v4805_v51  ;;  %v4888_v51 = vld [vmem:[#allocation5 + $0x8ac] ss:$16 sps:$4 sm:$0xff]  }
 0x162   :  { %2794 = vmatpush1.bf16.msra.mxu1 %v4808_v41  ;;  %2758 = vmatprep.subr.bf16.mxu0 %v4813_v55  ;;  %v4883_v41 = vld [vmem:[#allocation5 + $0x7a8] ss:$16 sps:$4 sm:$0xff]  }
 0x163   :  { %2795 = vmatprep.subr.bf16.mxu1 %v4816_v56  ;;  %v4886_v55 = vld [vmem:[#allocation5 + $0x8a8] ss:$16 sps:$4 sm:$0xff]   ;;  %v4891_v56 = vld [vmem:[#allocation5 + $0x78c] ss:$16 sps:$4 sm:$0xff]  }
 0x165   :  { %2759 = vmatpush2.bf16.msra.mxu0 %v4811_v57  ;;  %v4894_v57 = vld [vmem:[#allocation5 + $0x88c] ss:$16 sps:$4 sm:$0xff]  }
 0x166   :  { %2796 = vmatpush1.bf16.msra.mxu1 %v4814_v63  ;;  %2760 = vmatprep.subr.bf16.mxu0 %v4819_v58  ;;  %v4892_v63 = vld [vmem:[#allocation5 + $0x888] ss:$16 sps:$4 sm:$0xff]   ;;  %v4897_v58 = vld [vmem:[#allocation5 + $0x76c] ss:$16 sps:$4 sm:$0xff]  }
 0x167   :  { %2797 = vmatprep.subr.bf16.mxu1 %v4822_v59  ;;  %v4900_v59 = vld [vmem:[#allocation5 + $0x86c] ss:$16 sps:$4 sm:$0xff]  }
 0x169   :  { %2761 = vmatpush2.bf16.msra.mxu0 %v4817_v1  ;;  %v4898_v1 = vld [vmem:[#allocation5 + $0x868] ss:$16 sps:$4 sm:$0xff]  }
 0x16a   :  { %2798 = vmatpush1.bf16.msra.mxu1 %v4820_v2  ;;  %2836 = vmatprep.subr.bf16.mxu0 %v4828_v4  ;;  %v4903_v2 = vld [vmem:[#allocation5 + $0x74c] ss:$16 sps:$4 sm:$0xff]   ;;  %v4904_v4 = vld [vmem:[#allocation5 + $0x848] ss:$16 sps:$4 sm:$0xff]  }
 0x16b   :  { %2799 = vmatprep.subr.bf16.mxu1 %v4825_v3  ;;  %v4906_v3 = vld [vmem:[#allocation5 + $0x84c] ss:$16 sps:$4 sm:$0xff]  }
 0x16c   :  { %2763 = vmatmul.mubr.bf16.vlgmr.msra.gmra.mxu0 %v5396_v13  ;;  %v4849_v13 = vld [vmem:[#allocation5 + $0x56c] ss:$16 sps:$4 sm:$0xff]  }
 0x16d   :  { %2837 = vmatpush1.bf16.msra.mxu0 %v4826_v7  ;;  %2772 = vmatprep.mubr.bf16.mxu0 %v5423_v42  ;;  %v4855_v42 = vld [vmem:[#allocation5 + $0x54c] ss:$16 sps:$4 sm:$0xff]  }
 0x16e   :  { %2800 = vmatpush2.bf16.msra.mxu1 %v4823_v5  ;;  %2838 = vmatprep.subr.bf16.mxu0 %v4834_v10  ;;  %v4909_v5 = vld [vmem:[#allocation5 + $0x72c] ss:$16 sps:$4 sm:$0xff]  }
 0x16f   :  { %2801 = vmatprep.subr.bf16.mxu1 %v4831_v9  ;;  %v4912_v7 = vld [vmem:[#allocation5 + $0x82c] ss:$16 sps:$4 sm:$0xff]   ;;  %v4907_v9 = vld [vmem:[#allocation5 + $0x728] ss:$16 sps:$4 sm:$0xff]  }
 0x170   :  { %v4915_v10 = vld [vmem:[#allocation5 + $0x70c] ss:$16 sps:$4 sm:$0xff]  }
 0x171   :  { %2839 = vmatpush1.bf16.msra.mxu0 %v4832_v14  ;;  %v566_v14 = vld [vmem:[#allocation5 + $0xae8] sm:$0xff] }
 0x172   :  { %2802 = vmatpush2.bf16.msra.mxu1 %v4829_v11  ;;  %2840 = vmatprep.subr.bf16.mxu0 %v4840_v16  ;;  %v4918_v11 = vld [vmem:[#allocation5 + $0x80c] ss:$16 sps:$4 sm:$0xff]   ;;  %v4916_v16 = vld [vmem:[#allocation5 + $0x808] ss:$16 sps:$4 sm:$0xff]  }
 0x173   :  { %2803 = vmatprep.subr.bf16.mxu1 %v4837_v15  ;;  %v4913_v15 = vld [vmem:[#allocation5 + $0x708] ss:$16 sps:$4 sm:$0xff]  }
 0x174   :  { %2773 = vmatmul.mubr.bf16.gmra.mxu0 %v5431_v47  ;;  %v4859_v47 = vld [vmem:[#allocation5 + $0x528] ss:$16 sps:$4 sm:$0xff]  }
 0x175   :  { %2841 = vmatpush1.bf16.msra.mxu0 %v4838_v18  ;;  %2868 = vmatprep.mubr.bf16.mxu0 %v5450_v0  ;;  %v4870_v0 = vld [vmem:[#allocation5 + $0x60c] ss:$16 sps:$4 sm:$0xff]   ;;  %v4269_v18 = vcombine.high %v566_v14, %v566_v14 }
 0x176   :  { %2804 = vmatpush2.bf16.msra.mxu1 %v4835_v54  ;;  %2842 = vmatprep.subr.bf16.mxu0 %v4846_v20  ;;  %v4921_v54 = vld [vmem:[#allocation5 + $0x9ec] ss:$16 sps:$4 sm:$0xff]   ;;  %v4919_v20 = vld [vmem:[#allocation5 + $0x9e8] ss:$16 sps:$4 sm:$0xff]  }
 0x177   :  { %2805 = vmatprep.subr.bf16.mxu1 %v4843_v19  ;;  %v4268_v19 = vcombine.low %v566_v14, %v566_v14 }
 0x179   :  { %2843 = vmatpush1.bf16.msra.mxu0 %v4844_v53  ;;  %v4926_v53 = vld [vmem:[#allocation5 + $0x9cc] ss:$16 sps:$4 sm:$0xff]  }
 0x17a   :  { %2806 = vmatpush2.bf16.msra.mxu1 %v4841_v22  ;;  %2844 = vmatprep.subr.bf16.mxu0 %v4852_v23  ;;  %v2354_v22 = vsel %vm2346_vm0, %v4268_v19, 0  ;;  %v5584_v23 = vpop.f32.mrf.mxu1 }
 0x17b   :  { %2807 = vmatprep.subr.bf16.mxu1 %v4849_v13  ;;  %v4929_v13 = vld [vmem:[#allocation5 + $0xacc] ss:$16 sps:$4 sm:$0xff]  }
 0x17d   :  { %2845 = vmatpush1.bf16.msra.mxu0 %v4850_v25  ;;  %v4927_v25 = vld [vmem:[#allocation5 + $0xac8] ss:$16 sps:$4 sm:$0xff]  }
 0x17e   :  { %2808 = vmatpush2.bf16.msra.mxu1 %v4847_v24  ;;  %2846 = vmatprep.subr.bf16.mxu0 %v4858_v26  ;;  %v4924_v24 = vld [vmem:[#allocation5 + $0x9c8] ss:$16 sps:$4 sm:$0xff]   ;;  %v4935_v26 = vld [vmem:[#allocation5 + $0xaac] ss:$16 sps:$4 sm:$0xff]  }
 0x17f   :  { %2809 = vmatprep.subr.bf16.mxu1 %v4855_v42  ;;  %v4932_v42 = vld [vmem:[#allocation5 + $0x9ac] ss:$16 sps:$4 sm:$0xff]  }
 0x181   :  { %2847 = vmatpush1.bf16.msra.mxu0 %v4856_v28  ;;  %v4930_v28 = vld [vmem:[#allocation5 + $0x9a8] ss:$16 sps:$4 sm:$0xff]  }
 0x182   :  { %2810 = vmatpush2.bf16.msra.mxu1 %v4853_v27  ;;  %2848 = vmatprep.subr.bf16.mxu0 %v4864_v30  ;;  %v5587_v27 = vpop.f32.mrf.mxu1  ;;  %v5590_v30 = vpop.f32.mrf.mxu0 }
 0x183   :  { %2811 = vmatprep.subr.bf16.mxu1 %v4861_v29  ;;  %v4933_v29 = vld [vmem:[#allocation5 + $0xaa8] ss:$16 sps:$4 sm:$0xff]  }
 0x185   :  { %2849 = vmatpush1.bf16.msra.mxu0 %v4862_v31  ;;  %v5592_v31 = vpop.f32.mrf.mxu1 }
 0x186   :  { %2812 = vmatpush2.bf16.msra.mxu1 %v4859_v47  ;;  %2850 = vmatprep.subr.bf16.mxu0 %v4870_v0  ;;  %v4941_v47 = vld [vmem:[#allocation5 + $0xa8c] ss:$16 sps:$4 sm:$0xff]   ;;  %v4939_v0 = vld [vmem:[#allocation5 + $0xa88] ss:$16 sps:$4 sm:$0xff]  }
 0x187   :  { %2813 = vmatprep.subr.bf16.mxu1 %v4867_v34  ;;  %v4936_v34 = vld [vmem:[#allocation5 + $0x988] ss:$16 sps:$4 sm:$0xff]  }
 0x189   :  { %2851 = vmatpush1.bf16.msra.mxu0 %v4868_v36  ;;  %v4947_v36 = vld [vmem:[#allocation5 + $0xa6c] ss:$16 sps:$4 sm:$0xff]  }
 0x18a   :  { %2814 = vmatpush2.bf16.msra.mxu1 %v4865_v35  ;;  %2852 = vmatprep.subr.bf16.mxu0 %v4873_v37  ;;  %v5595_v35 = vpop.f32.mrf.mxu0  ;;  %v5597_v37 = vpop.f32.mrf.mxu1 }
 0x18b   :  { %2889 = vmatprep.subr.bf16.mxu1 %v4876_v38 }
 0x18c   :  { %v5600_v38 = vpop.f32.mrf.mxu1 }
 0x18d   :  { %2816 = vmatmul.mubr.bf16.vlgmr.msra.gmra.mxu1 %v5472_v48  ;;  %2853 = vmatpush2.bf16.msra.mxu0 %v4871_v12  ;;  %v4889_v48 = vld [vmem:[#allocation5 + $0x788] ss:$16 sps:$4 sm:$0xff]  }
 0x18e   :  { %2890 = vmatpush1.bf16.msra.mxu1 %v4874_v39  ;;  %2854 = vmatprep.subr.bf16.mxu0 %v4879_v43  ;;  %v4942_v12 = vld [vmem:[#allocation5 + $0x968] ss:$16 sps:$4 sm:$0xff]   ;;  %v5602_v39 = vpop.f32.mrf.mxu0  ;;  %v4950_v43 = vld [vmem:[#allocation5 + $0x94c] ss:$16 sps:$4 sm:$0xff]  }
 0x18f   :  { %2891 = vmatprep.subr.bf16.mxu1 %v4882_v33  ;;  %2825 = vmatprep.mubr.bf16.mxu1 %v5484_v60  ;;  %v4895_v60 = vld [vmem:[#allocation5 + $0x768] ss:$16 sps:$4 sm:$0xff]   ;;  %v4953_v33 = vld [vmem:[#allocation5 + $0xa4c] ss:$16 sps:$4 sm:$0xff]  }
 0x191   :  { %2855 = vmatpush2.bf16.msra.mxu0 %v4877_v45  ;;  %v5604_v45 = vpop.f32.mrf.mxu1 }
 0x192   :  { %2892 = vmatpush1.bf16.msra.mxu1 %v4880_v46  ;;  %2856 = vmatprep.subr.bf16.mxu0 %v4885_v50  ;;  %v4948_v46 = vld [vmem:[#allocation5 + $0x948] ss:$16 sps:$4 sm:$0xff]  }
 0x193   :  { %2893 = vmatprep.subr.bf16.mxu1 %v4888_v51  ;;  %v4951_v50 = vld [vmem:[#allocation5 + $0xa48] ss:$16 sps:$4 sm:$0xff]   ;;  %v5606_v51 = vpop.f32.mrf.mxu0 }
 0x195   :  { %2826 = vmatmul.mubr.bf16.gmra.mxu1 %v5504_v6  ;;  %2857 = vmatpush2.bf16.msra.mxu0 %v4883_v41  ;;  %v4901_v6 = vld [vmem:[#allocation5 + $0x748] ss:$16 sps:$4 sm:$0xff]   ;;  %v4956_v41 = vld [vmem:[#allocation5 + $0x92c] ss:$16 sps:$4 sm:$0xff]  }
 0x196   :  { %2894 = vmatpush1.bf16.msra.mxu1 %v4886_v55  ;;  %2858 = vmatprep.subr.bf16.mxu0 %v4891_v56  ;;  %v4959_v55 = vld [vmem:[#allocation5 + $0xa2c] ss:$16 sps:$4 sm:$0xff]   ;;  %v5608_v56 = vpop.f32.mrf.mxu0 }
 0x197   :  { %2895 = vmatprep.subr.bf16.mxu1 %v4894_v57  ;;  %2921 = vmatprep.mubr.bf16.mxu1 %v5516_v17  ;;  %v4910_v17 = vld [vmem:[#allocation5 + $0x828] ss:$16 sps:$4 sm:$0xff]   ;;  %v5610_v57 = vpop.f32.mrf.mxu1 }
 0x199   :  { %2859 = vmatpush2.bf16.msra.mxu0 %v4889_v48  ;;  %v4954_v48 = vld [vmem:[#allocation5 + $0x928] ss:$16 sps:$4 sm:$0xff]  }
 0x19a   :  { %2896 = vmatpush1.bf16.msra.mxu1 %v4892_v63  ;;  %2860 = vmatprep.subr.bf16.mxu0 %v4897_v58  ;;  %v4957_v63 = vld [vmem:[#allocation5 + $0xa28] ss:$16 sps:$4 sm:$0xff]   ;;  %v4962_v58 = vld [vmem:[#allocation5 + $0x90c] ss:$16 sps:$4 sm:$0xff]  }
 0x19b   :  { %2897 = vmatprep.subr.bf16.mxu1 %v4900_v59  ;;  %v4965_v59 = vld [vmem:[#allocation5 + $0xa0c] ss:$16 sps:$4 sm:$0xff]  }
 0x19d   :  { %2861 = vmatpush2.bf16.msra.mxu0 %v4895_v60  ;;  %v5612_v60 = vpop.f32.mrf.mxu0 }
 0x19e   :  { %2898 = vmatpush1.bf16.msra.mxu1 %v4898_v1  ;;  %2862 = vmatprep.subr.bf16.mxu0 %v4903_v2  ;;  %v5614_v1 = vpop.f32.mrf.mxu1  ;;  %v4960_v2 = vld [vmem:[#allocation5 + $0x908] ss:$16 sps:$4 sm:$0xff]  }
 0x19f   :  { %2899 = vmatprep.subr.bf16.mxu1 %v4906_v3  ;;  %v4963_v3 = vld [vmem:[#allocation5 + $0xa08] ss:$16 sps:$4 sm:$0xff]  }
 0x1a1   :  { %2863 = vmatpush2.bf16.msra.mxu0 %v4901_v6  ;;  %v4968_v6 = vld [vmem:[#allocation8 + $0x74] ss:$8 sps:$4 sm:$0xff]  }
 0x1a2   :  { %2900 = vmatpush1.bf16.msra.mxu1 %v4904_v4  ;;  %2864 = vmatprep.subr.bf16.mxu0 %v4909_v5  ;;  %v5618_v5 = vpop.f32.mrf.mxu0 }
 0x1a3   :  { %2901 = vmatprep.subr.bf16.mxu1 %v4912_v7  ;;  %v4966_v7 = vld [vmem:[#allocation8 + $0x70] ss:$8 sps:$4 sm:$0xff]  }
 0x1a5   :  { %2865 = vmatpush2.bf16.msra.mxu0 %v4907_v9  ;;  %v4971_v9 = vld [vmem:[#allocation8 + $0x64] ss:$8 sps:$4 sm:$0xff]  }
 0x1a6   :  { %2902 = vmatpush1.bf16.msra.mxu1 %v4910_v17  ;;  %2866 = vmatprep.subr.bf16.mxu0 %v4915_v10  ;;  %v5622_v10 = vpop.f32.mrf.mxu0 }
 0x1a7   :  { %2903 = vmatprep.subr.bf16.mxu1 %v4918_v11  ;;  %v4969_v11 = vld [vmem:[#allocation8 + $0x60] ss:$8 sps:$4 sm:$0xff]  }
 0x1a9   :  { %2867 = vmatpush2.bf16.msra.mxu0 %v4913_v15  ;;  %v4974_v15 = vld [vmem:[#allocation8 + $0x54] ss:$8 sps:$4 sm:$0xff]  }
 0x1aa   :  { %2904 = vmatpush1.bf16.msra.mxu1 %v4916_v16  ;;  %4273 = vmatprep.subr.msk.bf16.mxu0 %vm2346_vm0, %v4269_v18 }
 0x1ab   :  { %2905 = vmatprep.subr.bf16.mxu1 %v4921_v54  ;;  %v4972_v54 = vld [vmem:[#allocation8 + $0x50] ss:$8 sps:$4 sm:$0xff]  }
 0x1ac   :  { %2869 = vmatmul.mubr.bf16.vlgmr.msra.gmra.mxu0 %v5474_v49  ;;  %v4938_v49 = vld [vmem:[#allocation5 + $0x98c] ss:$16 sps:$4 sm:$0xff]   ;;  %v5628_v14 = vpop.f32.mrf.mxu0 }
 0x1ad   :  { %2943 = vmatpush1.bf16.msra.mxu0 %v2354_v22  ;;  %2878 = vmatprep.mubr.bf16.mxu0 %v5489_v62  ;;  %v4944_v62 = vld [vmem:[#allocation5 + $0x96c] ss:$16 sps:$4 sm:$0xff]   ;;  %v5616_v4 = vpop.f32.mrf.mxu1  ;;  %v4980_v22 = vld [vmem:[#allocation8 + $0x34] ss:$8 sps:$4 sm:$0xff]  }
 0x1ae   :  { %2906 = vmatpush2.bf16.msra.mxu1 %v4919_v20  ;;  %2944 = vmatprep.subr.bf16.mxu0 %v4929_v13  ;;  %v2501_v18 = vpop.f32.mrf.mxu0 }
 0x1af   :  { %2907 = vmatprep.subr.bf16.mxu1 %v4926_v53  ;;  %v5620_v17 = vpop.f32.mrf.mxu1 }
 0x1b0   :  { %v5640_v20 = vpop.f32.mrf.mxu0 }
 0x1b1   :  { %2945 = vmatpush1.bf16.msra.mxu0 %v4927_v25  ;;  %v5631_v16 = vpop.f32.mrf.mxu1 }
 0x1b2   :  { %2908 = vmatpush2.bf16.msra.mxu1 %v4924_v24  ;;  %2946 = vmatprep.subr.bf16.mxu0 %v4935_v26  ;;  %v4978_v24 = vld [vmem:[#allocation8 + $0x30] ss:$8 sps:$4 sm:$0xff]   ;;  %v2505_v25 = vpop.f32.mrf.mxu0  ;;  %v5016_v26 = vld [vmem:[#allocation8 + $0x174] ss:$8 sps:$4 sm:$0xff]  }
 0x1b3   :  { %2909 = vmatprep.subr.bf16.mxu1 %v4932_v42  ;;  %v5633_v19 = vpop.f32.mrf.mxu1  ;;  %v5014_v42 = vld [vmem:[#allocation8 + $0x170] ss:$8 sps:$4 sm:$0xff]  }
 0x1b4   :  { %2879 = vmatmul.mubr.bf16.gmra.mxu0 %v5506_v8  ;;  %v4945_v8 = vld [vmem:[#allocation5 + $0xa68] ss:$16 sps:$4 sm:$0xff]  }
 0x1b5   :  { %2947 = vmatpush1.bf16.msra.mxu0 %v4933_v29  ;;  %2974 = vmatprep.mubr.bf16.mxu0 %v5281_v21 }
 0x1b6   :  { %2910 = vmatpush2.bf16.msra.mxu1 %v4930_v28  ;;  %2948 = vmatprep.subr.bf16.mxu0 %v4941_v47  ;;  %v5019_v28 = vld [vmem:[#allocation8 + $0x164] ss:$8 sps:$4 sm:$0xff]   ;;  %v5649_v47 = vld [vmem:[#allocation6] sm:$0xf] }
 0x1b7   :  { %2911 = vmatprep.subr.bf16.mxu1 %v4938_v49  ;;  %v4981_v49 = vld [vmem:[#allocation8 + $0x20] ss:$8 sps:$4 sm:$0xff]  }
 0x1b9   :  { %2949 = vmatpush1.bf16.msra.mxu0 %v4939_v0  ;;  %v4986_v0 = vld [vmem:[#allocation8 + $0x14] ss:$8 sps:$4 sm:$0xff]  }
 0x1ba   :  { %2912 = vmatpush2.bf16.msra.mxu1 %v4936_v34  ;;  %2950 = vmatprep.subr.bf16.mxu0 %v4947_v36  ;;  %v5651_v34 = vpop.f32.mrf.mxu0 }
 0x1bb   :  { %2913 = vmatprep.subr.bf16.mxu1 %v4944_v62  ;;  %v5017_v62 = vld [vmem:[#allocation8 + $0x160] ss:$8 sps:$4 sm:$0xff]  }
 0x1bd   :  { %2951 = vmatpush1.bf16.msra.mxu0 %v4945_v8 }
 0x1be   :  { %2914 = vmatpush2.bf16.msra.mxu1 %v4942_v12  ;;  %2952 = vmatprep.subr.bf16.mxu0 %v4953_v33  ;;  %v5022_v12 = vld [vmem:[#allocation8 + $0x154] ss:$8 sps:$4 sm:$0xff]   ;;  %v5658_v33 = vpop.f32.mrf.mxu0 }
 0x1bf   :  { %2915 = vmatprep.subr.bf16.mxu1 %v4950_v43  ;;  %v4984_v43 = vld [vmem:[#allocation8 + $0x10] ss:$8 sps:$4 sm:$0xff]  }
 0x1c1   :  { %2953 = vmatpush1.bf16.msra.mxu0 %v4951_v50  ;;  %v5020_v50 = vld [vmem:[#allocation8 + $0x150] ss:$8 sps:$4 sm:$0xff]  }
 0x1c2   :  { %2916 = vmatpush2.bf16.msra.mxu1 %v4948_v46  ;;  %2954 = vmatprep.subr.bf16.mxu0 %v4959_v55  ;;  %v4989_v46 = vld [vmem:[#allocation8 + $0x4] ss:$8 sps:$4 sm:$0xff]  }
 0x1c3   :  { %2917 = vmatprep.subr.bf16.mxu1 %v4956_v41 }
 0x1c5   :  { %2955 = vmatpush1.bf16.msra.mxu0 %v4957_v63  ;;  %v4987_v63 = vld [vmem:[#allocation8] ss:$8 sps:$4 sm:$0xff]  }
 0x1c6   :  { %2918 = vmatpush2.bf16.msra.mxu1 %v4954_v48  ;;  %2956 = vmatprep.subr.bf16.mxu0 %v4965_v59  ;;  %v5025_v48 = vld [vmem:[#allocation8 + $0x144] ss:$8 sps:$4 sm:$0xff]   ;;  %v4992_v59 = vld [vmem:[#allocation8 + $0xf4] ss:$8 sps:$4 sm:$0xff]  }
 0x1c7   :  { %2919 = vmatprep.subr.bf16.mxu1 %v4962_v58  ;;  %v5663_v58 = vpop.f32.mrf.mxu0 }
 0x1c9   :  { %2957 = vmatpush1.bf16.msra.mxu0 %v4963_v3 }
 0x1ca   :  { %2920 = vmatpush2.bf16.msra.mxu1 %v4960_v2  ;;  %3448 = vmatprep.subr.bf16.mxu0 %v4968_v6  ;;  %v5023_v2 = vld [vmem:[#allocation8 + $0x140] ss:$8 sps:$4 sm:$0xff]  }
 0x1cb   :  { %3501 = vmatprep.subr.bf16.mxu1 %v5016_v26  ;;  %v4998_v26 = vld [vmem:[#allocation8 + $0xd4] ss:$8 sps:$4 sm:$0xff]  }
 0x1cc   :  { %4274 = vmatmul.mubr.msk.bf16.vlgmr.msra.gmra.mxu0 %vm2339_vm1, %v5526_v44  ;;  %v569_v44 = vlaneseq }
 0x1cd   :  { %2922 = vmatmul.mubr.bf16.vlgmr.msra.gmra.mxu1 %v5551_v32  ;;  %3449 = vmatpush1.bf16.msra.mxu0 %v4966_v7  ;;  %v4977_v32 = vld [vmem:[#allocation8 + $0x44] ss:$8 sps:$4 sm:$0xff]  }
 0x1ce   :  { %2931 = vmatprep.mubr.bf16.mxu1 %v5556_v40  ;;  %3450 = vmatprep.subr.bf16.mxu0 %v4971_v9  ;;  %v5638_v40 = vpop.f32.mrf.mxu1  ;;  %v5642_v53 = vshrl.u32 %v569_v44, 7 }
 0x1cf   :  { %2984 = vmatprep.mubr.bf16.mxu0 %v5281_v21  ;;  %v4975_v21 = vld [vmem:[#allocation8 + $0x40] ss:$8 sps:$4 sm:$0xff]   ;;  %3502 = vmatpush1.bf16.msra.mxu1 %v5014_v42 }
 0x1d0   :  { %v5644_v13 = vpop.f32.mrf.mxu1  ;;  %3503 = vmatprep.subr.bf16.mxu1 %v5019_v28 }
 0x1d1   :  { %3451 = vmatpush1.bf16.msra.mxu0 %v4969_v11  ;;  %v4990_v11 = vld [vmem:[#allocation8 + $0xf0] ss:$8 sps:$4 sm:$0xff]  }
 0x1d2   :  { %3452 = vmatprep.subr.bf16.mxu0 %v4974_v15  ;;  %v5647_v29 = vpop.f32.mrf.mxu1  ;;  %v2515_v15 = vpop.f32.mrf.mxu0 }
 0x1d3   :  { %3504 = vmatpush1.bf16.msra.mxu1 %v5017_v62 }
 0x1d4   :  { %4275 = vmatmul.mubr.msk.bf16.gmra.mxu0 %vm2339_vm1, %v5537_v61  ;;  %v575_v61 = vsub.s32 1, %v5642_v53  ;;  %v5656_v8 = vpop.f32.mrf.mxu1  ;;  %3505 = vmatprep.subr.bf16.mxu1 %v5022_v12  ;;  %v4996_v12 = vld [vmem:[#allocation8 + $0xd0] ss:$8 sps:$4 sm:$0xff]  }
 0x1d5   :  { %2932 = vmatmul.mubr.bf16.gmra.mxu1 %v5566_v52  ;;  %3453 = vmatpush1.bf16.msra.mxu0 %v4972_v54  ;;  %v4983_v52 = vld [vmem:[#allocation8 + $0x24] ss:$8 sps:$4 sm:$0xff]  }
 0x1d6   :  { %3454 = vmatprep.subr.bf16.mxu0 %v4977_v32  ;;  %v576_v36 = vrot.slane %v5649_v47, %v575_v61  ;;  %v5661_v55 = vpop.f32.mrf.mxu1  ;;  %v4995_v54 = vld [vmem:[#allocation8 + $0xe4] ss:$8 sps:$4 sm:$0xff]  }
 0x1d7   :  { %3506 = vmatpush1.bf16.msra.mxu1 %v5020_v50 }
 0x1d8   :  { %v2396_v41 = vadd.f32 %v5595_v35, %v576_v36  ;;  %v2660_v6 = vpop.f32.mrf.mxu1  ;;  %3507 = vmatprep.subr.bf16.mxu1 %v5025_v48  ;;  %v2400_v7 = vadd.f32 %v5606_v51, %v576_v36  ;;  %v571_v35 = vsub.s32 0, %v5642_v53  ;;  %v2406_v50 = vadd.f32 %v5612_v60, %v576_v36  ;;  %v5001_v48 = vld [vmem:[#allocation8 + $0xc4] ss:$8 sps:$4 sm:$0xff]  }
 0x1d9   :  { %3455 = vmatpush1.bf16.msra.mxu0 %v4975_v21 }
 0x1da   :  { %3456 = vmatprep.subr.bf16.mxu0 %v4980_v22  ;;  %v2449_v3 = vadd.f32 %v5587_v27, %v2396_v41  ;;  %v5668_v32 = vpop.f32.mrf.mxu1  ;;  %v2453_v44 = vadd.f32 %v5597_v37, %v2400_v7  ;;  %v572_v27 = vrot.slane %v5649_v47, %v571_v35  ;;  %v5026_v22 = vld [vmem:[#allocation8 + $0x130] ss:$8 sps:$4 sm:$0xff]  }
 0x1db   :  { %3508 = vmatpush1.bf16.msra.mxu1 %v5023_v2  ;;  %v5032_v7 = vld [vmem:[#allocation8 + $0x110] ss:$8 sps:$4 sm:$0xff]  }
 0x1dc   :  { %v2502_v9 = vadd.f32 %v2501_v18, %v2449_v3  ;;  %v4993_v18 = vld [vmem:[#allocation8 + $0xe0] ss:$8 sps:$4 sm:$0xff]   ;;  %v2398_v37 = vadd.f32 %v5602_v39, %v572_v27  ;;  %v2664_v28 = vpop.f32.mrf.mxu1 }
 0x1dd   :  { %3457 = vmatpush1.bf16.msra.mxu0 %v4978_v24  ;;  %v5028_v24 = vld [vmem:[#allocation8 + $0x134] ss:$8 sps:$4 sm:$0xff]  }
 0x1de   :  { %3458 = vmatprep.subr.bf16.mxu0 %v4983_v52  ;;  %v2555_v51 = vadd.f32 %v5620_v17, %v2502_v9  ;;  %v2506_v52 = vadd.f32 %v2505_v25, %v2453_v44  ;;  %3509 = vmatprep.subr.bf16.mxu1 %v5028_v24  ;;  %v2394_v17 = vadd.f32 %v5590_v30, %v572_v27  ;;  %v5029_v25 = vld [vmem:[#allocation8 + $0x120] ss:$8 sps:$4 sm:$0xff]   ;;  %v5034_v9 = vld [vmem:[#allocation8 + $0x114] ss:$8 sps:$4 sm:$0xff]  }
 0x1df   :  { %3510 = vmatpush1.bf16.msra.mxu1 %v5026_v22  ;;  %v5004_v44 = vld [vmem:[#allocation8 + $0xb4] ss:$8 sps:$4 sm:$0xff]   ;;  %v2404_v22 = vadd.f32 %v5608_v56, %v572_v27 }
 0x1e0   :  { %v2559_v41 = vadd.f32 %v5633_v19, %v2506_v52  ;;  %v2447_v3 = vadd.f32 %v5584_v23, %v2394_v17 }
 0x1e1   :  { %3459 = vmatpush1.bf16.msra.mxu0 %v4981_v49 }
 0x1e2   :  { %3460 = vmatprep.subr.bf16.mxu0 %v4986_v0  ;;  %v2410_v0 = vadd.f32 %v5622_v10, %v576_v36  ;;  %v4999_v36 = vld [vmem:[#allocation8 + $0xc0] ss:$8 sps:$4 sm:$0xff]   ;;  %v2500_v23 = vadd.f32 %v5628_v14, %v2447_v3 }
 0x1e3   :  { %v5035_v14 = vld [vmem:[#allocation8 + $0x100] ss:$8 sps:$4 sm:$0xff]  }
 0x1e4   :  { %v2463_v30 = vadd.f32 %v5614_v1, %v2410_v0  ;;  %v2553_v0 = vadd.f32 %v5616_v4, %v2500_v23  ;;  %v5005_v4 = vld [vmem:[#allocation8 + $0xa0] ss:$8 sps:$4 sm:$0xff]  }
 0x1e5   :  { %3461 = vmatpush1.bf16.msra.mxu0 %v4984_v43  ;;  %v5682_v43 = vpop.f32.mrf.mxu1 }
 0x1e6   :  { %3462 = vmatprep.subr.bf16.mxu0 %v4989_v46  ;;  %v5031_v46 = vld [vmem:[#allocation8 + $0x124] ss:$8 sps:$4 sm:$0xff]  }
 0x1e7   :  { %3511 = vmatprep.subr.bf16.mxu1 %v5031_v46  ;;  %v5692_v19 = vpop.f32.mrf.mxu1  ;;  %v5038_v46 = vld [vmem:[#allocation8 + $0x1f0] ss:$8 sps:$4 sm:$0xff]  }
 0x1e8   :  { %3512 = vmatpush1.bf16.msra.mxu1 %v5029_v25 }
 0x1e9   :  { %3463 = vmatpush1.bf16.msra.mxu0 %v4987_v63  ;;  %v2451_v63 = vadd.f32 %v5592_v31, %v2398_v37  ;;  %v2459_v31 = vadd.f32 %v5604_v45, %v2406_v50  ;;  %3513 = vmatprep.subr.bf16.mxu1 %v5034_v9  ;;  %v5705_v52 = vpop.f32.mrf.mxu1 }
 0x1ea   :  { %3464 = vmatprep.subr.bf16.mxu0 %v4992_v59 }
 0x1eb   :  { %v2504_v60 = vadd.f32 %v5640_v20, %v2451_v63 }
 0x1ec   :  { %v5671_v21 = vpop.f32.mrf.mxu0  ;;  %3514 = vmatpush1.bf16.msra.mxu1 %v5032_v7 }
 0x1ed   :  { %3465 = vmatpush2.bf16.msra.mxu0 %v4990_v11  ;;  %v5696_v11 = vstv %s5677_s1  ;;  %v2557_v24 = vadd.f32 %v5631_v16, %v2504_v60  ;;  %v5040_v16 = vld [vmem:[#allocation8 + $0x1f4] ss:$8 sps:$4 sm:$0xff]   ;;  %v5013_v60 = vld [vmem:[#allocation8 + $0x84] ss:$8 sps:$4 sm:$0xff]  }
 0x1ee   :  { %v2607_v42 = vpop.f32.mrf.mxu0  ;;  %3466 = vmatprep.subr.bf16.mxu0 %v4995_v54 }
 0x1ef   :  { %v2608_v49 = vadd.f32 %v2607_v42, %v2555_v51  ;;  %v2408_v51 = vadd.f32 %v5618_v5, %v572_v27  ;;  %v5002_v5 = vld [vmem:[#allocation8 + $0xb0] ss:$8 sps:$4 sm:$0xff]   ;;  %v5037_v42 = vld [vmem:[#allocation8 + $0x104] ss:$8 sps:$4 sm:$0xff]  }
 0x1f0   :  { %v2609_v62 = vpop.f32.mrf.mxu0  ;;  %3515 = vmatprep.subr.bf16.mxu1 %v5037_v42  ;;  %v5053_v42 = vld [vmem:[#allocation8 + $0x1a0] ss:$8 sps:$4 sm:$0xff]  }
 0x1f1   :  { %3467 = vmatpush2.bf16.msra.mxu0 %v4993_v18  ;;  %v2661_v10 = vadd.f32 %v2660_v6, %v2608_v49  ;;  %v2516_v6 = vadd.f32 %v2515_v15, %v2463_v30  ;;  %v2512_v18 = vadd.f32 %v5658_v33, %v2459_v31  ;;  %v2461_v49 = vadd.f32 %v5610_v57, %v2408_v51  ;;  %v2674_v57 = vpop.f32.mrf.mxu1  ;;  %v5008_v30 = vld [vmem:[#allocation8 + $0x90] ss:$8 sps:$4 sm:$0xff]   ;;  %v5011_v31 = vld [vmem:[#allocation8 + $0x80] ss:$8 sps:$4 sm:$0xff]  }
 0x1f2   :  { %v2611_v39 = vpop.f32.mrf.mxu0  ;;  %3468 = vmatprep.subr.bf16.mxu0 %v4998_v26  ;;  %v2610_v17 = vadd.f32 %v2609_v62, %v2557_v24  ;;  %3516 = vmatpush1.bf16.msra.mxu1 %v5035_v14  ;;  %v5043_v62 = vld [vmem:[#allocation8 + $0x1e4] ss:$8 sps:$4 sm:$0xff]   ;;  %v5050_v24 = vld [vmem:[#allocation8 + $0x1b0] ss:$8 sps:$4 sm:$0xff]  }
 0x1f3   :  { %v2612_v59 = vadd.f32 %v2611_v39, %v2559_v41  ;;  %v3013_v20 = vmul.f32 %v5696_v11, %v2661_v10  ;;  %vm2996_vm2 = vcmp.gt.f32.partialorder %v2661_v10, 0.0  ;;  %v2569_v26 = vadd.f32 %v5656_v8, %v2516_v6  ;;  %3517 = vmatprep.subr.bf16.mxu1 %v5040_v16 }
 0x1f4   :  { %v5688_v2 = vpop.f32.mrf.mxu0  ;;  %v2565_v27 = vadd.f32 %v5644_v13, %v2512_v18  ;;  %v2457_v8 = vadd.f32 %v5600_v38, %v2404_v22  ;;  %v2514_v50 = vadd.f32 %v5663_v58, %v2461_v49  ;;  %v2606_v41 = vadd.f32 %v5671_v21, %v2553_v0  ;;  %v5041_v38 = vld [vmem:[#allocation8 + $0x1e0] ss:$8 sps:$4 sm:$0xff]   ;;  %v5052_v22 = vld [vmem:[#allocation8 + $0x1b4] ss:$8 sps:$4 sm:$0xff]  }
 0x1f5   :  { %3469 = vmatpush2.bf16.msra.mxu0 %v4996_v12  ;;  %v2665_v1 = vadd.f32 %v2664_v28, %v2612_v59  ;;  %v5007_v28 = vld [vmem:[#allocation8 + $0xa4] ss:$8 sps:$4 sm:$0xff]   ;;  %v3029_v56 = vsel %vm2996_vm2, %v2661_v10, %v3013_v20  ;;  %v2663_v63 = vadd.f32 %v5668_v32, %v2610_v17  ;;  %v5046_v59 = vld [vmem:[#allocation8 + $0x1d4] ss:$8 sps:$4 sm:$0xff]  }
 0x1f6   :  { %v2617_v54 = vpop.f32.mrf.mxu0  ;;  %3470 = vmatprep.subr.bf16.mxu0 %v5001_v48  ;;  %v5010_v48 = vld [vmem:[#allocation8 + $0x94] ss:$8 sps:$4 sm:$0xff]   ;;  %v2510_v13 = vadd.f32 %v5651_v34, %v2457_v8  ;;  %3518 = vmatpush2.bf16.msra.mxu1 %v5038_v46  ;;  %v2567_v58 = vadd.f32 %v5647_v29, %v2514_v50  ;;  %v2659_v21 = vadd.f32 %v5661_v55, %v2606_v41  ;;  %v5044_v29 = vld [vmem:[#allocation8 + $0x1d0] ss:$8 sps:$4 sm:$0xff]  }
 0x1f7   :  { %vm3000_vm3 = vcmp.gt.f32.partialorder %v2665_v1, 0.0  ;;  %v3017_v45 = vmul.f32 %v5696_v11, %v2665_v1  ;;  %v2618_v39 = vadd.f32 %v2617_v54, %v2565_v27  ;;  %3519 = vmatprep.subr.bf16.mxu1 %v5043_v62  ;;  %v3016_v34 = vmul.f32 %v5696_v11, %v2663_v63  ;;  %v5064_v46 = vld [vmem:[#allocation11 + $0x70] sm:$0xff]  }
 0x1f8   :  { %v2619_v15 = vpop.f32.mrf.mxu0  ;;  %vm2999_vm4 = vcmp.gt.f32.partialorder %v2663_v63, 0.0  ;;  %v3012_v55 = vmul.f32 %v5696_v11, %v2659_v21  ;;  %vm2995_vm6 = vcmp.gt.f32.partialorder %v2659_v21, 0.0  ;;  %v5065_v41 = vld [vmem:[#allocation11 + $0x30] sm:$0xff]  }
 0x1f9   :  { %3471 = vmatpush2.bf16.msra.mxu0 %v4999_v36  ;;  %v3033_v33 = vsel %vm3000_vm3, %v2665_v1, %v3017_v45  ;;  %v2671_v3 = vadd.f32 %v5692_v19, %v2618_v39  ;;  %v2563_v36 = vadd.f32 %v5638_v40, %v2510_v13  ;;  %v2620_v32 = vadd.f32 %v2619_v15, %v2567_v58  ;;  %v5049_v19 = vld [vmem:[#allocation8 + $0x1c4] ss:$8 sps:$4 sm:$0xff]  }
 0x1fa   :  { %v2621_v37 = vpop.f32.mrf.mxu0  ;;  %3472 = vmatprep.subr.bf16.mxu0 %v5004_v44  ;;  %v3045_v25 = vpack.c.bf16 %v3033_v33, %v3029_v56  ;;  %3520 = vmatpush2.bf16.msra.mxu1 %v5041_v38  ;;  %v3032_v6 = vsel %vm2999_vm4, %v2663_v63, %v3016_v34  ;;  %v5047_v44 = vld [vmem:[#allocation8 + $0x1c0] ss:$8 sps:$4 sm:$0xff]   ;;  %v3028_v51 = vsel %vm2995_vm6, %v2659_v21, %v3012_v55  ;;  %v5061_v33 = vld [vmem:[#allocation8 + $0x184] ss:$8 sps:$4 sm:$0xff]  }
 0x1fb   :  { %v2622_v12 = vadd.f32 %v2621_v37, %v2569_v26  ;;  %v2616_v9 = vadd.f32 %v5688_v2, %v2563_v36  ;;  %3521 = vmatprep.subr.bf16.mxu1 %v5046_v59  ;;  %v3021_v40 = vmul.f32 %v5696_v11, %v2671_v3  ;;  %vm3004_vm7 = vcmp.gt.f32.partialorder %v2671_v3, 0.0  ;;  %v5058_v26 = vld [vmem:[#allocation8 + $0x194] ss:$8 sps:$4 sm:$0xff]   ;;  %v5056_v37 = vld [vmem:[#allocation8 + $0x190] ss:$8 sps:$4 sm:$0xff]  }
 0x1fc   :  { %3480 = vmatprep.mubr.bf16.mxu0 %v3045_v25  ;;  %v2673_v1 = vadd.f32 %v5705_v52, %v2620_v32  ;;  %v3044_v2 = vpack.c.bf16 %v3032_v6, %v3028_v51  ;;  %v5063_v25 = vld [vmem:[#allocation11 + $0x38] sm:$0xff]   ;;  %v5067_v39 = vld [vmem:[#allocation11 + $0x28] sm:$0xff]  }
 0x1fd   :  { %3473 = vmatpush2.bf16.msra.mxu0 %v5002_v5  ;;  %v2675_v10 = vadd.f32 %v2674_v57, %v2622_v12  ;;  %v2669_v23 = vadd.f32 %v5682_v43, %v2616_v9  ;;  %v3037_v20 = vsel %vm3004_vm7, %v2671_v3, %v3021_v40  ;;  %v5055_v5 = vld [vmem:[#allocation8 + $0x1a4] ss:$8 sps:$4 sm:$0xff]   ;;  %v5062_v12 = vld [vmem:[#allocation11 + $0x78] sm:$0xff]   ;;  %v583_v40 = vsub.s32 3, %v5642_v53 }
 0x1fe   :  { %3474 = vmatprep.subr.bf16.mxu0 %v5007_v28  ;;  %3522 = vmatpush2.bf16.msra.mxu1 %v5044_v29  ;;  %v3024_v18 = vmul.f32 %v5696_v11, %v2673_v1  ;;  %vm3007_vm8 = vcmp.gt.f32.partialorder %v2673_v1, 0.0  ;;  %v5059_v28 = vld [vmem:[#allocation8 + $0x180] ss:$8 sps:$4 sm:$0xff]  }
 0x1ff   :  { %v3025_v7 = vmul.f32 %v5696_v11, %v2675_v10  ;;  %vm3008_vm5 = vcmp.gt.f32.partialorder %v2675_v10, 0.0  ;;  %3523 = vmatprep.subr.bf16.mxu1 %v5049_v19  ;;  %v3020_v15 = vmul.f32 %v5696_v11, %v2669_v23  ;;  %vm3003_vm9 = vcmp.gt.f32.partialorder %v2669_v23, 0.0  ;;  %v5066_v57 = vld [vmem:[#allocation11 + $0x68] sm:$0xff]   ;;  %v5070_v38 = vld [vmem:[#allocation11 + $0x58] sm:$0xff]  }
 0x200   :  { %v3040_v52 = vsel %vm3007_vm8, %v2673_v1, %v3024_v18  ;;  %v579_v19 = vsub.s32 2, %v5642_v53 }
 0x201   :  { %3475 = vmatpush2.bf16.msra.mxu0 %v5005_v4  ;;  %v3041_v54 = vsel %vm3008_vm5, %v2675_v10, %v3025_v7  ;;  %v3036_v43 = vsel %vm3003_vm9, %v2669_v23, %v3020_v15  ;;  %v5069_v10 = vld [vmem:[#allocation11 + $0x20] sm:$0xff]  }
 0x202   :  { %3476 = vmatprep.subr.bf16.mxu0 %v5010_v48  ;;  %v3049_v45 = vpack.c.bf16 %v3041_v54, %v3037_v20  ;;  %3524 = vmatpush2.bf16.msra.mxu1 %v5047_v44  ;;  %v3048_v14 = vpack.c.bf16 %v3040_v52, %v3036_v43  ;;  %v5068_v48 = vld [vmem:[#allocation11 + $0x60] sm:$0xff]   ;;  %v580_v54 = vrot.slane %v5649_v47, %v579_v19 }
 0x203   :  { %3525 = vmatprep.subr.bf16.mxu1 %v5052_v22  ;;  %v584_v44 = vrot.slane %v5649_v47, %v583_v40 }
 0x205   :  { %3477 = vmatpush2.bf16.msra.mxu0 %v5008_v30 }
 0x206   :  { %3478 = vmatprep.subr.bf16.mxu0 %v5013_v60  ;;  %3526 = vmatpush2.bf16.msra.mxu1 %v5050_v24 }
 0x207   :  { %3527 = vmatprep.subr.bf16.mxu1 %v5055_v5 }
 0x209   :  { %3479 = vmatpush2.bf16.msra.mxu0 %v5011_v31 }
 0x20a   :  { %3528 = vmatpush2.bf16.msra.mxu1 %v5053_v42  ;;  %4366 = vmatprep.subr.bf16.mxu0 %v5062_v12 }
 0x20b   :  { %3529 = vmatprep.subr.bf16.mxu1 %v5058_v26 }
 0x20c   :  { %3481 = vmatmul.mubr.bf16.vlgmr.msra.gmra.mxu0 %v3044_v2 }
 0x20d   :  { %3490 = vmatprep.mubr.bf16.mxu0 %v3049_v45  ;;  %v2711_v49 = vpop.f32.mrf.mxu1  ;;  %4367 = vmatpush3.bf16.msra.mxu0 %v5063_v25 }
 0x20e   :  { %3530 = vmatpush2.bf16.msra.mxu1 %v5056_v37  ;;  %4368 = vmatprep.subr.bf16.mxu0 %v5064_v46  ;;  %v2712_v2 = vadd.f32 %v2711_v49, %v580_v54 }
 0x20f   :  { %3531 = vmatprep.subr.bf16.mxu1 %v5061_v33  ;;  %v2713_v17 = vpop.f32.mrf.mxu1 }
 0x210   :  { %v2714_v20 = vadd.f32 %v2713_v17, %v584_v44 }
 0x211   :  { %v2715_v16 = vpop.f32.mrf.mxu1  ;;  %4369 = vmatpush3.bf16.msra.mxu0 %v5065_v41 }
 0x212   :  { %3532 = vmatpush2.bf16.msra.mxu1 %v5059_v28  ;;  %4370 = vmatprep.subr.bf16.mxu0 %v5066_v57  ;;  %v2716_v18 = vadd.f32 %v2715_v16, %v580_v54 }
 0x213   :  { %v2717_v8 = vpop.f32.mrf.mxu1 }
 0x214   :  { %3491 = vmatmul.mubr.bf16.gmra.mxu0 %v3048_v14  ;;  %v2718_v14 = vadd.f32 %v2717_v8, %v584_v44 }
 0x215   :  { %v2721_v4 = vpop.f32.mrf.mxu1  ;;  %4371 = vmatpush3.bf16.msra.mxu0 %v5067_v39 }
 0x216   :  { %4372 = vmatprep.subr.bf16.mxu0 %v5068_v48  ;;  %v2722_v25 = vadd.f32 %v2721_v4, %v580_v54 }
 0x217   :  { %v2723_v13 = vpop.f32.mrf.mxu1 }
 0x218   :  { %v2724_v37 = vadd.f32 %v2723_v13, %v584_v44 }
 0x219   :  { %v2725_v58 = vpop.f32.mrf.mxu1  ;;  %4373 = vmatpush3.bf16.msra.mxu0 %v5069_v10 }
 0x21a   :  { %4374 = vmatprep.subr.bf16.mxu0 %v5070_v38  ;;  %v2726_v46 = vadd.f32 %v2725_v58, %v580_v54 }
 0x21b   :  { %v2727_v30 = vpop.f32.mrf.mxu1 }
 0x21c   :  { %v2728_v49 = vadd.f32 %v2727_v30, %v584_v44 }
 0x22c   :  { %v2764_v0 = vpop.f32.mrf.mxu0 }
 0x22d   :  { %v2765_v45 = vadd.f32 %v2764_v0, %v2712_v2 }
 0x22e   :  { %v2766_v56 = vpop.f32.mrf.mxu0 }
 0x22f   :  { %v2767_v15 = vadd.f32 %v2766_v56, %v2714_v20 }
 0x230   :  { %v2768_v27 = vpop.f32.mrf.mxu0 }
 0x231   :  { %v2769_v52 = vadd.f32 %v2768_v27, %v2716_v18 }
 0x232   :  { %v2770_v50 = vpop.f32.mrf.mxu0 }
 0x233   :  { %v2771_v47 = vadd.f32 %v2770_v50, %v2718_v14 }
 0x234   :  { %v5730_v62 = vpop.f32.mrf.mxu0 }
 0x235   :  { %v2775_v10 = vadd.f32 %v5730_v62, %v2722_v25 }
 0x236   :  { %v2776_v63 = vpop.f32.mrf.mxu0 }
 0x237   :  { %v2777_v48 = vadd.f32 %v2776_v63, %v2724_v37 }
 0x238   :  { %v2778_v21 = vpop.f32.mrf.mxu0 }
 0x239   :  { %v2779_v13 = vadd.f32 %v2778_v21, %v2726_v46 }
 0x23a   :  { %v2780_v59 = vpop.f32.mrf.mxu0 }
 0x23b   :  { %v2781_v38 = vadd.f32 %v2780_v59, %v2728_v49 }
 0x24d   :  { %v2817_v3 = vpop.f32.mrf.mxu1 }
 0x24e   :  { %v2818_v43 = vadd.f32 %v2817_v3, %v2765_v45 }
 0x24f   :  { %v2819_v36 = vpop.f32.mrf.mxu1 }
 0x250   :  { %v2820_v5 = vadd.f32 %v2819_v36, %v2767_v15 }
 0x251   :  { %v2821_v32 = vpop.f32.mrf.mxu1 }
 0x252   :  { %v2822_v33 = vadd.f32 %v2821_v32, %v2769_v52 }
 0x253   :  { %v2823_v29 = vpop.f32.mrf.mxu1 }
 0x254   :  { %v2824_v57 = vadd.f32 %v2823_v29, %v2771_v47 }
 0x255   :  { %v2827_v9 = vpop.f32.mrf.mxu1 }
 0x257   :  { %v2829_v6 = vpop.f32.mrf.mxu1 }
 0x258   :  { %v2830_v4 = vadd.f32 %v2829_v6, %v2777_v48  ;;  %v5074_v48 = vld [vmem:[#allocation11 + $0x48] sm:$0xff]  }
 0x259   :  { %v2831_v51 = vpop.f32.mrf.mxu1 }
 0x25a   :  { %v2832_v32 = vadd.f32 %v2831_v51, %v2779_v13  ;;  %v5078_v13 = vld [vmem:[#allocation14 + $0x38] sm:$0xff]  }
 0x25b   :  { %v2833_v22 = vpop.f32.mrf.mxu1  ;;  %4404 = vmatprep.subr.bf16.mxu1 %v5078_v13 }
 0x25c   :  { %v2834_v40 = vadd.f32 %v2833_v22, %v2781_v38  ;;  %v5079_v38 = vld [vmem:[#allocation14 + $0x30] sm:$0xff]  }
 0x26c   :  { %v2870_v60 = vpop.f32.mrf.mxu0 }
 0x26d   :  { %v2871_v28 = vadd.f32 %v2870_v60, %v2818_v43 }
 0x26e   :  { %v2872_v34 = vpop.f32.mrf.mxu0 }
 0x26f   :  { %v2873_v12 = vadd.f32 %v2872_v34, %v2820_v5  ;;  %v2828_v34 = vadd.f32 %v2827_v9, %v2775_v10  ;;  %v5077_v10 = vld [vmem:[#allocation11] sm:$0xff]  }
 0x270   :  { %v2874_v7 = vpop.f32.mrf.mxu0 }
 0x271   :  { %v2875_v0 = vadd.f32 %v2874_v7, %v2822_v33 }
 0x272   :  { %v2876_v55 = vpop.f32.mrf.mxu0 }
 0x273   :  { %v2877_v3 = vadd.f32 %v2876_v55, %v2824_v57  ;;  %v5071_v57 = vld [vmem:[#allocation11 + $0x18] sm:$0xff]  }
 0x274   :  { %v2880_v31 = vpop.f32.mrf.mxu0  ;;  %4375 = vmatpush3.bf16.msra.mxu0 %v5071_v57 }
 0x275   :  { %v2881_v63 = vadd.f32 %v2880_v31, %v2828_v34 }
 0x276   :  { %v2882_v1 = vpop.f32.mrf.mxu0 }
 0x277   :  { %v2883_v54 = vadd.f32 %v2882_v1, %v2830_v4 }
 0x278   :  { %v2884_v23 = vpop.f32.mrf.mxu0 }
 0x279   :  { %v2885_v44 = vadd.f32 %v2884_v23, %v2832_v32 }
 0x27a   :  { %v2886_v24 = vpop.f32.mrf.mxu0 }
 0x27b   :  { %v2887_v31 = vadd.f32 %v2886_v24, %v2834_v40 }
 0x28c   :  { %v2976_v26 = vpop.f32.mrf.mxu0 }
 0x28d   :  { %v2923_v42 = vpop.f32.mrf.mxu1 }
 0x28e   :  { %v2978_v16 = vpop.f32.mrf.mxu0  ;;  %v2924_v56 = vadd.f32 %v2923_v42, %v2871_v28 }
 0x28f   :  { %v2925_v17 = vpop.f32.mrf.mxu1 }
 0x290   :  { %v2926_v41 = vadd.f32 %v2925_v17, %v2873_v12  ;;  %v2980_v39 = vpop.f32.mrf.mxu0  ;;  %v2977_v58 = vadd.f32 %v2976_v26, %v2924_v56 }
 0x291   :  { %v2927_v27 = vpop.f32.mrf.mxu1 }
 0x292   :  { %v2928_v8 = vadd.f32 %v2927_v27, %v2875_v0  ;;  %v2982_v50 = vpop.f32.mrf.mxu0  ;;  %v2979_v30 = vadd.f32 %v2978_v16, %v2926_v41  ;;  %v3014_v2 = vmul.f32 %v5696_v11, %v2977_v58  ;;  %vm2997_vm13 = vcmp.gt.f32.partialorder %v2977_v58, 0.0  ;;  %v5072_v27 = vld [vmem:[#allocation11 + $0x50] sm:$0xff]  }
 0x293   :  { %v2929_v60 = vpop.f32.mrf.mxu1  ;;  %4376 = vmatprep.subr.bf16.mxu0 %v5072_v27  ;;  %v5080_v27 = vld [vmem:[#allocation14 + $0x28] sm:$0xff]  }
 0x294   :  { %v2981_v36 = vadd.f32 %v2980_v39, %v2928_v8  ;;  %v2930_v7 = vadd.f32 %v2929_v60, %v2877_v3  ;;  %v2986_v29 = vpop.f32.mrf.mxu0  ;;  %v3015_v6 = vmul.f32 %v5696_v11, %v2979_v30  ;;  %vm2998_vm11 = vcmp.gt.f32.partialorder %v2979_v30, 0.0  ;;  %v5073_v39 = vld [vmem:[#allocation11 + $0x10] sm:$0xff]   ;;  %v5075_v8 = vld [vmem:[#allocation11 + $0x8] sm:$0xff]  }
 0x295   :  { %v2933_v19 = vpop.f32.mrf.mxu1  ;;  %v3030_v42 = vsel %vm2997_vm13, %v2977_v58, %v3014_v2  ;;  %4377 = vmatpush3.bf16.msra.mxu0 %v5073_v39  ;;  %v3116_v58 = vld [vmem:[#allocation9] sm:$0x3]  ;;  %v5081_v39 = vld [vmem:[#allocation14 + $0x20] sm:$0xff]  }
 0x296   :  { %v3018_v62 = vmul.f32 %v5696_v11, %v2981_v36  ;;  %v2983_v21 = vadd.f32 %v2982_v50, %v2930_v7  ;;  %v2988_v55 = vpop.f32.mrf.mxu0  ;;  %vm3001_vm10 = vcmp.gt.f32.partialorder %v2981_v36, 0.0  ;;  %v2934_v51 = vadd.f32 %v2933_v19, %v2881_v63  ;;  %4378 = vmatprep.subr.bf16.mxu0 %v5074_v48  ;;  %v5082_v48 = vld [vmem:[#allocation14 + $0x18] sm:$0xff]  }
 0x297   :  { %v2935_v59 = vpop.f32.mrf.mxu1  ;;  %v3031_v14 = vsel %vm2998_vm11, %v2979_v30, %v3015_v6  ;;  %v3125_v30 = vrot.slane %v3116_v58, %v575_v61 }
 0x298   :  { %v2936_v20 = vadd.f32 %v2935_v59, %v2883_v54  ;;  %vm3002_vm12 = vcmp.gt.f32.partialorder %v2983_v21, 0.0  ;;  %v3019_v9 = vmul.f32 %v5696_v11, %v2983_v21  ;;  %v2990_v1 = vpop.f32.mrf.mxu0  ;;  %v3034_v15 = vsel %vm3001_vm10, %v2981_v36, %v3018_v62 }
 0x299   :  { %v2937_v18 = vpop.f32.mrf.mxu1  ;;  %v2987_v26 = vadd.f32 %v2986_v29, %v2934_v51  ;;  %v3046_v28 = vpack.c.bf16 %v3034_v15, %v3030_v42  ;;  %4379 = vmatpush3.bf16.msra.mxu0 %v5075_v8  ;;  %v3121_v36 = vrot.slane %v3116_v58, %v571_v35  ;;  %v3562_v59 = vstv %s3916_s9  ;;  %v5083_v8 = vld [vmem:[#allocation14 + $0x10] sm:$0xff]  }
 0x29a   :  { %v2989_v23 = vadd.f32 %v2988_v55, %v2936_v20  ;;  %v2938_v45 = vadd.f32 %v2937_v18, %v2885_v44  ;;  %v3035_v52 = vsel %vm3002_vm12, %v2983_v21, %v3019_v9  ;;  %v2992_v37 = vpop.f32.mrf.mxu0  ;;  %v3771_v58 = vstv %s3917_s15 }
 0x29b   :  { %v2939_v22 = vpop.f32.mrf.mxu1  ;;  %v3047_v33 = vpack.c.bf16 %v3035_v52, %v3031_v14  ;;  %v3022_v46 = vmul.f32 %v5696_v11, %v2987_v26  ;;  %vm3005_vm1 = vcmp.gt.f32.partialorder %v2987_v26, 0.0 }
 0x29c   :  { %v2991_v43 = vadd.f32 %v2990_v1, %v2938_v45  ;;  %v2940_v5 = vadd.f32 %v2939_v22, %v2887_v31  ;;  %v3023_v12 = vmul.f32 %v5696_v11, %v2989_v23  ;;  %vm3006_vm14 = vcmp.gt.f32.partialorder %v2989_v23, 0.0 }
 0x29d   :  { %3533 = vmatprep.mubr.bf16.mxu1 %v3047_v33  ;;  %v3038_v56 = vsel %vm3005_vm1, %v2987_v26, %v3022_v46 }
 0x29e   :  { %v2993_v47 = vadd.f32 %v2992_v37, %v2940_v5  ;;  %v3026_v24 = vmul.f32 %v5696_v11, %v2991_v43  ;;  %vm3009_vm15 = vcmp.gt.f32.partialorder %v2991_v43, 0.0  ;;  %3534 = vmatmul.mubr.bf16.vlgmr.msra.gmra.mxu1 %v3046_v28  ;;  %v3039_v49 = vsel %vm3006_vm14, %v2989_v23, %v3023_v12 }
 0x29f   :  { %4405 = vmatpush3.bf16.msra.mxu1 %v5078_v13 }
 0x2a0   :  { %vm3010_vm0 = vcmp.gt.f32.partialorder %v2993_v47, 0.0  ;;  %v3027_v25 = vmul.f32 %v5696_v11, %v2993_v47  ;;  %v3042_v0 = vsel %vm3009_vm15, %v2991_v43, %v3026_v24  ;;  %v5076_v11 = vld [vmem:[#allocation11 + $0x40] sm:$0xff]   ;;  %4406 = vmatprep.subr.bf16.mxu1 %v5079_v38 }
 0x2a1   :  { %v3050_v41 = vpack.c.bf16 %v3042_v0, %v3038_v56  ;;  %4380 = vmatprep.subr.bf16.mxu0 %v5076_v11  ;;  %v5084_v11 = vld [vmem:[#allocation14 + $0x8] sm:$0xff]  }
 0x2a2   :  { %v3043_v17 = vsel %vm3010_vm0, %v2993_v47, %v3027_v25  ;;  %4381 = vmatpush3.bf16.msra.mxu0 %v5077_v10  ;;  %v5085_v10 = vld [vmem:[#allocation14] sm:$0xff]  }
 0x2a3   :  { %v3051_v16 = vpack.c.bf16 %v3043_v17, %v3039_v49  ;;  %4407 = vmatpush3.bf16.msra.mxu1 %v5079_v38  ;;  %v4340_v38 = vld [vmem:[#allocation12] ss:$0 sm:$0xff] }
 0x2a4   :  { %4408 = vmatprep.subr.bf16.mxu1 %v5080_v27 }
 0x2a5   :  { %3543 = vmatprep.mubr.bf16.mxu1 %v3051_v16 }
 0x2a6   :  { %3544 = vmatmul.mubr.bf16.gmra.mxu1 %v3050_v41 }
 0x2a7   :  { %4409 = vmatpush3.bf16.msra.mxu1 %v5080_v27 }
 0x2a8   :  { %4410 = vmatprep.subr.bf16.mxu1 %v5081_v39 }
 0x2ab   :  { %4411 = vmatpush3.bf16.msra.mxu1 %v5081_v39 }
 0x2ac   :  { %4412 = vmatprep.subr.bf16.mxu1 %v5082_v48 }
 0x2af   :  { %4413 = vmatpush3.bf16.msra.mxu1 %v5082_v48 }
 0x2b0   :  { %4414 = vmatprep.subr.bf16.mxu1 %v5083_v8 }
 0x2b3   :  { %4415 = vmatpush3.bf16.msra.mxu1 %v5083_v8 }
 0x2b4   :  { %4416 = vmatprep.subr.bf16.mxu1 %v5084_v11 }
 0x2b7   :  { %4417 = vmatpush3.bf16.msra.mxu1 %v5084_v11 }
 0x2b8   :  { %4418 = vmatprep.subr.bf16.mxu1 %v5085_v10 }
 0x2bb   :  { %4419 = vmatpush3.bf16.msra.mxu1 %v5085_v10 }
 0x2cc   :  { %v3482_v3 = vpop.f32.mrf.mxu0 }
 0x2cd   :  { %v3483_v19 = vadd.f32 %v3482_v3, %v3121_v36 }
 0x2ce   :  { %v3484_v60 = vpop.f32.mrf.mxu0 }
 0x2cf   :  { %v3485_v7 = vadd.f32 %v3484_v60, %v3125_v30 }
 0x2d0   :  { %v3486_v50 = vpop.f32.mrf.mxu0 }
 0x2d1   :  { %v3487_v54 = vadd.f32 %v3486_v50, %v3121_v36 }
 0x2d2   :  { %v3488_v4 = vpop.f32.mrf.mxu0 }
 0x2d3   :  { %v3489_v21 = vadd.f32 %v3488_v4, %v3125_v30 }
 0x2d4   :  { %v3492_v34 = vpop.f32.mrf.mxu0 }
 0x2d5   :  { %v3493_v1 = vadd.f32 %v3492_v34, %v3121_v36 }
 0x2d6   :  { %v3494_v29 = vpop.f32.mrf.mxu0 }
 0x2d7   :  { %v3495_v51 = vadd.f32 %v3494_v29, %v3125_v30 }
 0x2d8   :  { %v3496_v2 = vpop.f32.mrf.mxu0 }
 0x2d9   :  { %v3497_v15 = vadd.f32 %v3496_v2, %v3121_v36 }
 0x2da   :  { %v3498_v31 = vpop.f32.mrf.mxu0 }
 0x2db   :  { %v3499_v37 = vadd.f32 %v3498_v31, %v3125_v30 }
 0x35e   :  { %v3535_v32 = vpop.f32.mrf.mxu1 }
 0x35f   :  { %v3536_v44 = vadd.f32 %v3535_v32, %v3483_v19 }
 0x360   :  { %v3537_v40 = vpop.f32.mrf.mxu1 }
 0x361   :  { %v3538_v63 = vadd.f32 %v3537_v40, %v3485_v7  ;;  %v3563_v35 = vmul.f32 %v3562_v59, %v3536_v44  ;;  %vm3554_vm4 = vcmp.gt.f32.partialorder %v3536_v44, 0.0 }
 0x362   :  { %v3539_v62 = vpop.f32.mrf.mxu1 }
 0x363   :  { %v3540_v55 = vadd.f32 %v3539_v62, %v3487_v54  ;;  %v3564_v61 = vmul.f32 %v3562_v59, %v3538_v63  ;;  %vm3555_vm3 = vcmp.gt.f32.partialorder %v3538_v63, 0.0  ;;  %v3571_v5 = vsel %vm3554_vm4, %v3536_v44, %v3563_v35 }
 0x364   :  { %v3541_v6 = vpop.f32.mrf.mxu1 }
 0x365   :  { %vm3556_vm2 = vcmp.gt.f32.partialorder %v3540_v55, 0.0  ;;  %v3565_v20 = vmul.f32 %v3562_v59, %v3540_v55  ;;  %v3542_v53 = vadd.f32 %v3541_v6, %v3489_v21  ;;  %v3572_v52 = vsel %vm3555_vm3, %v3538_v63, %v3564_v61 }
 0x366   :  { %v3545_v9 = vpop.f32.mrf.mxu1 }
 0x367   :  { %vm3557_vm5 = vcmp.gt.f32.partialorder %v3542_v53, 0.0  ;;  %v3566_v18 = vmul.f32 %v3562_v59, %v3542_v53  ;;  %v3573_v23 = vsel %vm3556_vm2, %v3540_v55, %v3565_v20  ;;  %v3546_v14 = vadd.f32 %v3545_v9, %v3493_v1  ;;  %v4357_v9 = vld [vmem:[#allocation15] ss:$0 sm:$0xff] }
 0x368   :  { %v3547_v45 = vpop.f32.mrf.mxu1  ;;  %v3579_v33 = vpack.c.bf16 %v3573_v23, %v3571_v5 }
 0x369   :  { %v3548_v22 = vadd.f32 %v3547_v45, %v3495_v51  ;;  %v3574_v43 = vsel %vm3557_vm5, %v3542_v53, %v3566_v18  ;;  %v3567_v46 = vmul.f32 %v3562_v59, %v3546_v14  ;;  %vm3558_vm8 = vcmp.gt.f32.partialorder %v3546_v14, 0.0 }
 0x36a   :  { %v3549_v42 = vpop.f32.mrf.mxu1  ;;  %v3580_v26 = vpack.c.bf16 %v3574_v43, %v3572_v52 }
 0x36b   :  { %v3550_v28 = vadd.f32 %v3549_v42, %v3497_v15  ;;  %v3568_v47 = vmul.f32 %v3562_v59, %v3548_v22  ;;  %vm3559_vm7 = vcmp.gt.f32.partialorder %v3548_v22, 0.0  ;;  %v3575_v41 = vsel %vm3558_vm8, %v3546_v14, %v3567_v46 }
 0x36c   :  { %v3551_v12 = vpop.f32.mrf.mxu1  ;;  %3750 = vmatprep.mubr.bf16.mxu0 %v3580_v26 }
 0x36d   :  { %vm3560_vm6 = vcmp.gt.f32.partialorder %v3550_v28, 0.0  ;;  %v3569_v24 = vmul.f32 %v3562_v59, %v3550_v28  ;;  %v3552_v25 = vadd.f32 %v3551_v12, %v3499_v37  ;;  %3751 = vmatmul.mubr.bf16.vlgmr.msra.gmra.mxu0 %v3579_v33  ;;  %v3576_v16 = vsel %vm3559_vm7, %v3548_v22, %v3568_v47 }
 0x36f   :  { %vm3561_vm9 = vcmp.gt.f32.partialorder %v3552_v25, 0.0  ;;  %v3570_v49 = vmul.f32 %v3562_v59, %v3552_v25  ;;  %v3577_v17 = vsel %vm3560_vm6, %v3550_v28, %v3569_v24 }
 0x370   :  { %v3581_v57 = vpack.c.bf16 %v3577_v17, %v3575_v41 }
 0x371   :  { %v3578_v0 = vsel %vm3561_vm9, %v3552_v25, %v3570_v49 }
 0x372   :  { %v3582_v56 = vpack.c.bf16 %v3578_v0, %v3576_v16 }
 0x374   :  { %3758 = vmatprep.mubr.bf16.mxu0 %v3582_v56 }
 0x375   :  { %3759 = vmatmul.mubr.bf16.gmra.mxu0 %v3581_v57 }
 0x42d   :  { %v4382_v13 = vpop.f32.mrf.mxu0 }
 0x42f   :  { %v4383_v3 = vpop.f32.mrf.mxu0 }
 0x430   :  { %v4384_v60 = vadd.f32 %v4383_v3, %v4382_v13 }
 0x431   :  { %v4385_v50 = vpop.f32.mrf.mxu0 }
 0x432   :  { %v3753_v4 = vadd.f32 %v4384_v60, %v4340_v38 }
 0x433   :  { %v4386_v30 = vpop.f32.mrf.mxu0 }
 0x434   :  { %v4387_v36 = vadd.f32 %v4386_v30, %v4385_v50  ;;  %v3772_v32 = vmul.f32 %v3771_v58, %v3753_v4  ;;  %vm3767_vm10 = vcmp.gt.f32.partialorder %v3753_v4, 0.0 }
 0x435   :  { %v4388_v34 = vpop.f32.mrf.mxu0 }
 0x436   :  { %v3756_v7 = vadd.f32 %v4387_v36, %v4340_v38  ;;  %v3776_v44 = vsel %vm3767_vm10, %v3753_v4, %v3772_v32 }
 0x437   :  { %v4389_v19 = vpop.f32.mrf.mxu0 }
 0x438   :  { %vm3768_vm11 = vcmp.gt.f32.partialorder %v3756_v7, 0.0  ;;  %v3773_v29 = vmul.f32 %v3771_v58, %v3756_v7  ;;  %v4390_v40 = vadd.f32 %v4389_v19, %v4388_v34 }
 0x439   :  { %v4391_v54 = vpop.f32.mrf.mxu0 }
 0x43a   :  { %v3761_v63 = vadd.f32 %v4390_v40, %v4340_v38  ;;  %v3777_v62 = vsel %vm3768_vm11, %v3756_v7, %v3773_v29 }
 0x43b   :  { %v4392_v21 = vpop.f32.mrf.mxu0  ;;  %v3780_v59 = vpack.c.bf16 %v3777_v62, %v3776_v44 }
 0x43c   :  { %v4393_v55 = vadd.f32 %v4392_v21, %v4391_v54  ;;  %v3774_v2 = vmul.f32 %v3771_v58, %v3761_v63  ;;  %vm3769_vm12 = vcmp.gt.f32.partialorder %v3761_v63, 0.0 }
 0x43d   :  { %4420 = vmatprep.mubr.bf16.mxu1 %v3780_v59 }
 0x43e   :  { %v3764_v6 = vadd.f32 %v4393_v55, %v4340_v38  ;;  %v3778_v20 = vsel %vm3769_vm12, %v3761_v63, %v3774_v2 }
 0x440   :  { %vm3770_vm13 = vcmp.gt.f32.partialorder %v3764_v6, 0.0  ;;  %v3775_v61 = vmul.f32 %v3771_v58, %v3764_v6 }
 0x442   :  { %v3779_v53 = vsel %vm3770_vm13, %v3764_v6, %v3775_v61 }
 0x443   :  { %v3781_v35 = vpack.c.bf16 %v3779_v53, %v3778_v20 }
 0x445   :  { %4421 = vmatmul.mubr.bf16.vlgmr.msra.gmra.mxu1 %v3781_v35 }
 0x505   :  { %v4422_v51 = vpop.f32.mrf.mxu1 }
 0x506   :  { %v3896_v18 = vadd.f32 %v4422_v51, %v4357_v9 }
 0x507   :  { %v3887_v1 = vpop.f32.mrf.mxu1 }
 0x508   :  { %3904 = vst [vmem:[%s5771_s10 + $0x10] sm:$0xff] %v3896_v18  ;;  %v3888_v31 = vadd.f32 %v4357_v9, %v3887_v1 }
 0x509   :  { %v4423_v23 = vpop.f32.mrf.mxu1 }
 0x50a   :  { %3902 = vst [vmem:[%s5771_s10] sm:$0xff] %v3888_v31  ;;  %v3899_v45 = vadd.f32 %v4423_v23, %v4357_v9 }
 0x50b   :  { %v3890_v15 = vpop.f32.mrf.mxu1 }
 0x50c   :  { %3905 = vst [vmem:[%s5771_s10 + $0x18] sm:$0xff] %v3899_v45  ;;  %v3891_v22 = vadd.f32 %v4357_v9, %v3890_v15 }
 0x50e   :  { %3903 = vst [vmem:[%s5771_s10 + $0x8] sm:$0xff] %v3891_v22 }
 0x50f   :  { %3910 = vsyncpa [#allocation3], 1 }
 0x510   :  { %3911 = vsyncpa [#allocation7], 1 }
 0x511   :  { %3912 = vsyncpa [#allocation10], 1 }
 0x512   :  { %3913 = vsyncpa [#allocation13], 1 }
 0x513   :  { %3914 = vsyncpa [#allocation16], 1 }
 0x514   :  { %3915 = vsyncpa [#allocation4], 1 }

</bundles_post_ra>
